<compile_context>
chip_gen: v7x
topology: tpu7x:2x2x1
jax: 0.10.0
libtpu: 0.0.40
codegen_flags: <defaults>
</compile_context>

<pallas_src>
import math

import jax
import jax.numpy as jnp
from jax import lax
from jax.experimental import pallas as pl
from jax.experimental.pallas import tpu as pltpu

# Model dimensions (from OneModel.__init__)
BACKBONE_DIM = 1000          # efficientnet_v2_s classifier output
X2_DIM = 163                 # 1000 + 163 = 1163 = lin1 in_features
D1 = 512                     # lin1 / ResidualBlock width
D2 = 128                     # lin2 out_features
D3 = 1                       # lin3 out_features
BN_EPS = 1e-5


def _round_up(x, m):
    return ((x + m - 1) // m) * m


# ------------------------------- Pallas kernel -------------------------------

def _head_kernel(h1_ref, x2_ref, w1a_ref, w1b_ref, wf1_ref, wf2_ref, w2_ref,
                 shifts_ref, out_ref):
    f32 = jnp.float32
    bf16 = jnp.bfloat16

    # Consolidated per-feature constants (f32):
    #   row 0: lin1+bn1 shift   row 1: rb.fc1+rb.bn1 shift   row 2: rb.fc2+rb.bn2 shift
    #   row 3[:128]: lin2+bn2 shift   row 4[0]: lin3 bias   row 5[:128]: lin3 weight row
    t1 = shifts_ref[0:1, :]
    tf1 = shifts_ref[1:2, :]
    tf2 = shifts_ref[2:3, :]
    t2 = shifts_ref[3:4, 0:D2]
    b3 = shifts_ref[4:5, 0:1]
    w3r = shifts_ref[5:6, 0:D2]

    # lin1 + bn1 (folded) on cat((h1, x2)): two split-K dots into one f32 acc.
    h = jnp.dot(h1_ref[...].astype(bf16), w1a_ref[...], preferred_element_type=f32)
    h = h + jnp.dot(x2_ref[...].astype(bf16), w1b_ref[...], preferred_element_type=f32)
    h = jnp.maximum(h + t1, 0.0)

    # ResidualBlock(512, 512): fc1+bn1, ReLU, fc2+bn2, +identity, ReLU.
    identity = h
    r = jnp.dot(h.astype(bf16), wf1_ref[...], preferred_element_type=f32) + tf1
    r = jnp.maximum(r, 0.0)
    r = jnp.dot(r.astype(bf16), wf2_ref[...], preferred_element_type=f32) + tf2
    h = jnp.maximum(r + identity, 0.0)

    # lin2 + bn2 + ReLU (+ dropout p=0.1 -> identity in eval).
    h = jnp.dot(h.astype(bf16), w2_ref[...], preferred_element_type=f32) + t2
    h = jnp.maximum(h, 0.0)

    # lin3 (N=1): [1,128] @ [TB,128]^T -> lane-dense [1,TB] output row.
    row = lax.dot_general(
        w3r.astype(bf16), h.astype(bf16),
        dimension_numbers=(((1,), (1,)), ((), ())),
        preferred_element_type=f32)
    out_ref[...] = row + b3


def _pick_batch_tile(B):
    """Batch rows per grid step (16-aligned, <=512)."""
    if B <= 32:
        # Tiny batch: single grid step.  The kernel is weight-DMA bound here,
        # so splitting across TensorCores would just double the weight fetch.
        return _round_up(B, 16)
    # Medium/large batch: give megacore >= 2 grid steps, cap the tile at 512.
    return min(512, _round_up((B + 1) // 2, 16))


def one_model_head(h1, x2, kp):
    """Runs the OneModel MLP head in a single Pallas kernel, batch-tiled grid."""
    B = h1.shape[0]
    TB = _pick_batch_tile(B)
    Bp = _round_up(B, TB)
    if Bp != B:
        h1 = jnp.pad(h1, ((0, Bp - B), (0, 0)))
        x2 = jnp.pad(x2, ((0, Bp - B), (0, 0)))
    n_tiles = Bp // TB

    # Advisory cost estimate so XLA schedules surrounding ops around the call.
    flops = 2 * Bp * (BACKBONE_DIM * D1 + X2_DIM * D1 + 2 * D1 * D1
                      + D1 * D2 + D2 * D3)
    weight_bytes = 2 * (BACKBONE_DIM * D1 + X2_DIM * D1 + 2 * D1 * D1 + D1 * D2) \
        + 4 * 8 * D1
    bytes_accessed = Bp * (BACKBONE_DIM + X2_DIM) * 4 + weight_bytes + Bp * 4

    out = pl.pallas_call(
        _head_kernel,
        out_shape=jax.ShapeDtypeStruct((n_tiles, 1, TB), jnp.float32),
        grid=(n_tiles,),
        in_specs=[
            pl.BlockSpec((TB, BACKBONE_DIM), lambda i: (i, 0)),   # h1: batch-tiled
            pl.BlockSpec((TB, X2_DIM), lambda i: (i, 0)),         # x2: batch-tiled
            pl.BlockSpec((BACKBONE_DIM, D1), lambda i: (0, 0)),   # weights: resident
            pl.BlockSpec((X2_DIM, D1), lambda i: (0, 0)),
            pl.BlockSpec((D1, D1), lambda i: (0, 0)),
            pl.BlockSpec((D1, D1), lambda i: (0, 0)),
            pl.BlockSpec((D1, D2), lambda i: (0, 0)),
            pl.BlockSpec((8, D1), lambda i: (0, 0)),              # packed shifts slab
        ],
        out_specs=pl.BlockSpec((None, 1, TB), lambda i: (i, 0, 0)),
        compiler_params=pltpu.CompilerParams(
            dimension_semantics=("parallel",),
            vmem_limit_bytes=32 << 20,
        ),
        cost_estimate=pl.CostEstimate(flops=flops, transcendentals=0,
                                      bytes_accessed=bytes_accessed),
    )(h1, x2, kp["w1a"], kp["w1b"], kp["wf1"], kp["wf2"], kp["w2"], kp["shifts"])
    return out.reshape(Bp, 1)[:B]


# ----------------------- deterministic parameter init ------------------------

def _kaiming_normal(key, out_f, in_f):
    # kaiming_normal_(nonlinearity='relu'), fan_in mode: std = sqrt(2 / fan_in)
    std = math.sqrt(2.0 / in_f)
    return std * jax.random.normal(key, (out_f, in_f), jnp.float32)


def _default_linear(key, out_f, in_f):
    # PyTorch default Linear init: U(-1/sqrt(fan_in), 1/sqrt(fan_in))
    bound = 1.0 / math.sqrt(in_f)
    kw, kb = jax.random.split(key)
    w = jax.random.uniform(kw, (out_f, in_f), jnp.float32, -bound, bound)
    b = jax.random.uniform(kb, (out_f,), jnp.float32, -bound, bound)
    return w, b


def _bn_defaults(n):
    # BatchNorm1d defaults: gamma=1, beta=0, running_mean=0, running_var=1.
    return (jnp.ones((n,), jnp.float32), jnp.zeros((n,), jnp.float32),
            jnp.zeros((n,), jnp.float32), jnp.ones((n,), jnp.float32))


def init_raw_params(key):
    """PyTorch-equivalent raw parameters (weights [out,in], f32)."""
    k = jax.random.split(key, 8)
    p = {}
    p["lin1_w"] = _kaiming_normal(k[0], D1, BACKBONE_DIM + X2_DIM)
    p["lin1_b"] = jnp.zeros((D1,), jnp.float32)
    p["bn1"] = _bn_defaults(D1)
    p["rb_fc1_w"] = _kaiming_normal(k[1], D1, D1)
    p["rb_fc1_b"] = jnp.zeros((D1,), jnp.float32)
    p["rb_bn1"] = _bn_defaults(D1)
    p["rb_fc2_w"] = _kaiming_normal(k[2], D1, D1)
    p["rb_fc2_b"] = jnp.zeros((D1,), jnp.float32)
    p["rb_bn2"] = _bn_defaults(D1)
    p["lin2_w"] = _kaiming_normal(k[3], D2, D1)
    p["lin2_b"] = jnp.zeros((D2,), jnp.float32)
    p["bn2"] = _bn_defaults(D2)
    p["lin3_w"], p["lin3_b"] = _default_linear(k[4], D3, D2)
    return p


def _fold(w, b, bn):
    """Fold Linear (w [out,in], b [out]) + inference BatchNorm into (w' bf16, shift f32)."""
    gamma, beta, mean, var = bn
    s = gamma / jnp.sqrt(var + BN_EPS)
    t = beta - mean * s
    wf = (w * s[:, None]).T.astype(jnp.bfloat16)     # [in, out], BN scale per out-col
    shift = (b * s + t).astype(jnp.float32)          # [out]
    return wf, shift


def prepare_kernel_params(raw):
    w1, sh1 = _fold(raw["lin1_w"], raw["lin1_b"], raw["bn1"])   # [1163, 512] bf16
    w1a = w1[:BACKBONE_DIM, :]                                  # rows for h1 (K=1000)
    w1b = w1[BACKBONE_DIM:, :]                                  # rows for x2 (K=163)
    wf1, shf1 = _fold(raw["rb_fc1_w"], raw["rb_fc1_b"], raw["rb_bn1"])
    wf2, shf2 = _fold(raw["rb_fc2_w"], raw["rb_fc2_b"], raw["rb_bn2"])
    w2, sh2 = _fold(raw["lin2_w"], raw["lin2_b"], raw["bn2"])

    shifts = jnp.zeros((8, D1), jnp.float32)
    shifts = shifts.at[0, :].set(sh1)
    shifts = shifts.at[1, :].set(shf1)
    shifts = shifts.at[2, :].set(shf2)
    shifts = shifts.at[3, :D2].set(sh2)
    shifts = shifts.at[4, 0].set(raw["lin3_b"][0])
    shifts = shifts.at[5, :D2].set(raw["lin3_w"][0, :])
    return dict(w1a=w1a, w1b=w1b, wf1=wf1, wf2=wf2, w2=w2, shifts=shifts)


# ------------------------------- references ----------------------------------

def reference_f32(h1, x2, p):
    """Faithful f32 PyTorch-semantics forward (unfolded BN, inference mode)."""
    def bn(y, stats):
        g, b, m, v = stats
        return (y - m) / jnp.sqrt(v + BN_EPS) * g + b

    h = jnp.concatenate([h1, x2], axis=1)
    h = h @ p["lin1_w"].T + p["lin1_b"]
    h = jnp.maximum(bn(h, p["bn1"]), 0.0)
    ident = h
    r = h @ p["rb_fc1_w"].T + p["rb_fc1_b"]
    r = jnp.maximum(bn(r, p["rb_bn1"]), 0.0)
    r = r @ p["rb_fc2_w"].T + p["rb_fc2_b"]
    r = bn(r, p["rb_bn2"])
    h = jnp.maximum(r + ident, 0.0)
    h = h @ p["lin2_w"].T + p["lin2_b"]
    h = jnp.maximum(bn(h, p["bn2"]), 0.0)
    return h @ p["lin3_w"].T + p["lin3_b"]


def reference_folded_bf16(h1, x2, kp):
    """Pure-JAX replica of the kernel numerics (bf16 matmuls, f32 accum)."""
    f32, bf16 = jnp.float32, jnp.bfloat16
    sh = kp["shifts"]
    t1, tf1, tf2 = sh[0:1, :], sh[1:2, :], sh[2:3, :]
    t2, b3, w3r = sh[3:4, :D2], sh[4, 0], sh[5, :D2]

    h = jnp.dot(h1.astype(bf16), kp["w1a"], preferred_element_type=f32)
    h = h + jnp.dot(x2.astype(bf16), kp["w1b"], preferred_element_type=f32)
    h = jnp.maximum(h + t1, 0.0)
    ident = h
    r = jnp.maximum(jnp.dot(h.astype(bf16), kp["wf1"], preferred_element_type=f32) + tf1, 0.0)
    r = jnp.dot(r.astype(bf16), kp["wf2"], preferred_element_type=f32) + tf2
    h = jnp.maximum(r + ident, 0.0)
    h = jnp.maximum(jnp.dot(h.astype(bf16), kp["w2"], preferred_element_type=f32) + t2, 0.0)
    out = jnp.dot(h.astype(bf16), w3r.astype(bf16)[:, None], preferred_element_type=f32)
    return out + b3


# ---------------------------------- main --------------------------------------

if __name__ == "__main__":
    key = jax.random.PRNGKey(0)
    kp_key, kh, kx = jax.random.split(key, 3)

    B = 8
    raw = init_raw_params(kp_key)
    kparams = prepare_kernel_params(raw)

    # TODO(synk): efficientnet_v2_s(x1) backbone is not translated to Pallas;
    # we feed its 1000-d output feature vector h1 directly.
    h1 = jax.random.normal(kh, (B, BACKBONE_DIM), jnp.float32)
    x2 = jax.random.normal(kx, (B, X2_DIM), jnp.float32)

    out = one_model_head(h1, x2, kparams)
    out = jax.block_until_ready(out)
    assert out.shape == (B, D3)

    # Tight check: same bf16/f32-accum numerics as the kernel, in pure JAX.
    ref_bf16 = reference_folded_bf16(h1, x2, kparams)
    assert jnp.allclose(out, ref_bf16, atol=2e-2, rtol=2e-2), "mismatch vs bf16 reference"

    # Loose check: full-f32 PyTorch-semantics reference (bf16 weight quantization noise).
    ref_f32 = reference_f32(h1, x2, raw)
    assert jnp.allclose(out, ref_f32, atol=0.3, rtol=0.1), "mismatch vs f32 reference"

    print("KERNEL_OK")
</pallas_src>

<mosaic_0001>
module attributes {stable_mosaic.version = 11 : i64} {
  func.func @_head_kernel(%arg0: i32, %arg1: memref<16x1000xf32, #tpu.memory_space<vmem>>, %arg2: memref<16x163xf32, #tpu.memory_space<vmem>>, %arg3: memref<1000x512xbf16, #tpu.memory_space<vmem>>, %arg4: memref<163x512xbf16, #tpu.memory_space<vmem>>, %arg5: memref<512x512xbf16, #tpu.memory_space<vmem>>, %arg6: memref<512x512xbf16, #tpu.memory_space<vmem>>, %arg7: memref<512x128xbf16, #tpu.memory_space<vmem>>, %arg8: memref<8x512xf32, #tpu.memory_space<vmem>>, %arg9: memref<1x1x16xf32, #tpu.memory_space<vmem>>) attributes {dimension_semantics = [#tpu.dimension_semantics<parallel>], iteration_bounds = array<i64: 1>, scalar_prefetch = 0 : i64, scratch_operands = 0 : i64, tpu.core_type = #tpu.core_type<tc>, window_params = [{transform_indices = @transform_0, window_bounds = array<i64: 16, 1000>}, {transform_indices = @transform_1, window_bounds = array<i64: 16, 163>}, {pipeline_mode = #tpu.pipeline_mode<synchronous>, transform_indices = @transform_2, window_bounds = array<i64: 1000, 512>}, {pipeline_mode = #tpu.pipeline_mode<synchronous>, transform_indices = @transform_3, window_bounds = array<i64: 163, 512>}, {pipeline_mode = #tpu.pipeline_mode<synchronous>, transform_indices = @transform_4, window_bounds = array<i64: 512, 512>}, {pipeline_mode = #tpu.pipeline_mode<synchronous>, transform_indices = @transform_5, window_bounds = array<i64: 512, 512>}, {pipeline_mode = #tpu.pipeline_mode<synchronous>, transform_indices = @transform_6, window_bounds = array<i64: 512, 128>}, {pipeline_mode = #tpu.pipeline_mode<synchronous>, transform_indices = @transform_7, window_bounds = array<i64: 8, 512>}, {transform_indices = @transform_8, window_bounds = array<i64: 1, 1, 16>}]} {
    %c0 = arith.constant 0 : index
    %c0_0 = arith.constant 0 : index
    %0 = vector.load %arg8[%c0, %c0_0] : memref<8x512xf32, #tpu.memory_space<vmem>>, vector<1x512xf32>
    %c1 = arith.constant 1 : index
    %c0_1 = arith.constant 0 : index
    %1 = vector.load %arg8[%c1, %c0_1] : memref<8x512xf32, #tpu.memory_space<vmem>>, vector<1x512xf32>
    %c2 = arith.constant 2 : index
    %c0_2 = arith.constant 0 : index
    %2 = vector.load %arg8[%c2, %c0_2] : memref<8x512xf32, #tpu.memory_space<vmem>>, vector<1x512xf32>
    %c3 = arith.constant 3 : index
    %c0_3 = arith.constant 0 : index
    %3 = vector.load %arg8[%c3, %c0_3] : memref<8x512xf32, #tpu.memory_space<vmem>>, vector<1x128xf32>
    %c4 = arith.constant 4 : index
    %c0_4 = arith.constant 0 : index
    %4 = vector.load %arg8[%c4, %c0_4] : memref<8x512xf32, #tpu.memory_space<vmem>>, vector<1x1xf32>
    %c5 = arith.constant 5 : index
    %c0_5 = arith.constant 0 : index
    %5 = vector.load %arg8[%c5, %c0_5] : memref<8x512xf32, #tpu.memory_space<vmem>>, vector<1x128xf32>
    %c0_6 = arith.constant 0 : index
    %c0_7 = arith.constant 0 : index
    %6 = vector.load %arg1[%c0_6, %c0_7] : memref<16x1000xf32, #tpu.memory_space<vmem>>, vector<16x1000xf32>
    %7 = arith.truncf %6 : vector<16x1000xf32> to vector<16x1000xbf16>
    %c0_8 = arith.constant 0 : index
    %c0_9 = arith.constant 0 : index
    %8 = vector.load %arg3[%c0_8, %c0_9] : memref<1000x512xbf16, #tpu.memory_space<vmem>>, vector<1000x512xbf16>
    %cst = arith.constant dense<0.000000e+00> : vector<16x512xf32>
    %9 = tpu.matmul %7, %8, %cst {dimension_numbers = #tpu.dot_dimension_numbers<[1], [0], [0], [1], [0, 0, 1, 1], [], []>} : vector<16x1000xbf16>, vector<1000x512xbf16>, vector<16x512xf32> -> vector<16x512xf32>
    %c0_10 = arith.constant 0 : index
    %c0_11 = arith.constant 0 : index
    %10 = vector.load %arg2[%c0_10, %c0_11] : memref<16x163xf32, #tpu.memory_space<vmem>>, vector<16x163xf32>
    %11 = arith.truncf %10 : vector<16x163xf32> to vector<16x163xbf16>
    %c0_12 = arith.constant 0 : index
    %c0_13 = arith.constant 0 : index
    %12 = vector.load %arg4[%c0_12, %c0_13] : memref<163x512xbf16, #tpu.memory_space<vmem>>, vector<163x512xbf16>
    %cst_14 = arith.constant dense<0.000000e+00> : vector<16x512xf32>
    %13 = tpu.matmul %11, %12, %cst_14 {dimension_numbers = #tpu.dot_dimension_numbers<[1], [0], [0], [1], [0, 0, 1, 1], [], []>} : vector<16x163xbf16>, vector<163x512xbf16>, vector<16x512xf32> -> vector<16x512xf32>
    %14 = arith.addf %9, %13 : vector<16x512xf32>
    %15 = vector.broadcast %0 : vector<1x512xf32> to vector<16x512xf32>
    %16 = arith.addf %14, %15 : vector<16x512xf32>
    %cst_15 = arith.constant 0.000000e+00 : f32
    %17 = vector.broadcast %cst_15 : f32 to vector<16x512xf32>
    %18 = arith.maximumf %16, %17 : vector<16x512xf32>
    %19 = arith.truncf %18 : vector<16x512xf32> to vector<16x512xbf16>
    %c0_16 = arith.constant 0 : index
    %c0_17 = arith.constant 0 : index
    %20 = vector.load %arg5[%c0_16, %c0_17] : memref<512x512xbf16, #tpu.memory_space<vmem>>, vector<512x512xbf16>
    %cst_18 = arith.constant dense<0.000000e+00> : vector<16x512xf32>
    %21 = tpu.matmul %19, %20, %cst_18 {dimension_numbers = #tpu.dot_dimension_numbers<[1], [0], [0], [1], [0, 0, 1, 1], [], []>} : vector<16x512xbf16>, vector<512x512xbf16>, vector<16x512xf32> -> vector<16x512xf32>
    %22 = vector.broadcast %1 : vector<1x512xf32> to vector<16x512xf32>
    %23 = arith.addf %21, %22 : vector<16x512xf32>
    %cst_19 = arith.constant 0.000000e+00 : f32
    %24 = vector.broadcast %cst_19 : f32 to vector<16x512xf32>
    %25 = arith.maximumf %23, %24 : vector<16x512xf32>
    %26 = arith.truncf %25 : vector<16x512xf32> to vector<16x512xbf16>
    %c0_20 = arith.constant 0 : index
    %c0_21 = arith.constant 0 : index
    %27 = vector.load %arg6[%c0_20, %c0_21] : memref<512x512xbf16, #tpu.memory_space<vmem>>, vector<512x512xbf16>
    %cst_22 = arith.constant dense<0.000000e+00> : vector<16x512xf32>
    %28 = tpu.matmul %26, %27, %cst_22 {dimension_numbers = #tpu.dot_dimension_numbers<[1], [0], [0], [1], [0, 0, 1, 1], [], []>} : vector<16x512xbf16>, vector<512x512xbf16>, vector<16x512xf32> -> vector<16x512xf32>
    %29 = vector.broadcast %2 : vector<1x512xf32> to vector<16x512xf32>
    %30 = arith.addf %28, %29 : vector<16x512xf32>
    %31 = arith.addf %30, %18 : vector<16x512xf32>
    %cst_23 = arith.constant 0.000000e+00 : f32
    %32 = vector.broadcast %cst_23 : f32 to vector<16x512xf32>
    %33 = arith.maximumf %31, %32 : vector<16x512xf32>
    %34 = arith.truncf %33 : vector<16x512xf32> to vector<16x512xbf16>
    %c0_24 = arith.constant 0 : index
    %c0_25 = arith.constant 0 : index
    %35 = vector.load %arg7[%c0_24, %c0_25] : memref<512x128xbf16, #tpu.memory_space<vmem>>, vector<512x128xbf16>
    %cst_26 = arith.constant dense<0.000000e+00> : vector<16x128xf32>
    %36 = tpu.matmul %34, %35, %cst_26 {dimension_numbers = #tpu.dot_dimension_numbers<[1], [0], [0], [1], [0, 0, 1, 1], [], []>} : vector<16x512xbf16>, vector<512x128xbf16>, vector<16x128xf32> -> vector<16x128xf32>
    %37 = vector.broadcast %3 : vector<1x128xf32> to vector<16x128xf32>
    %38 = arith.addf %36, %37 : vector<16x128xf32>
    %cst_27 = arith.constant 0.000000e+00 : f32
    %39 = vector.broadcast %cst_27 : f32 to vector<16x128xf32>
    %40 = arith.maximumf %38, %39 : vector<16x128xf32>
    %41 = arith.truncf %5 : vector<1x128xf32> to vector<1x128xbf16>
    %42 = arith.truncf %40 : vector<16x128xf32> to vector<16x128xbf16>
    %cst_28 = arith.constant dense<0.000000e+00> : vector<1x16xf32>
    %43 = tpu.matmul %41, %42, %cst_28 {dimension_numbers = #tpu.dot_dimension_numbers<[1], [1], [0], [0], [0, 0, 1, 0], [], []>} : vector<1x128xbf16>, vector<16x128xbf16>, vector<1x16xf32> -> vector<1x16xf32>
    %44 = vector.broadcast %4 : vector<1x1xf32> to vector<1x16xf32>
    %45 = arith.addf %43, %44 : vector<1x16xf32>
    %c0_29 = arith.constant 0 : index
    %c0_30 = arith.constant 0 : index
    %c0_31 = arith.constant 0 : index
    %46 = vector.load %arg9[%c0_29, %c0_30, %c0_31] : memref<1x1x16xf32, #tpu.memory_space<vmem>>, vector<1x1x16xf32>
    %47 = vector.shape_cast %46 : vector<1x1x16xf32> to vector<1x16xf32>
    %48 = vector.shape_cast %45 : vector<1x16xf32> to vector<1x1x16xf32>
    tpu.vector_store %arg9[%c0_29, %c0_30, %c0_31], %48 {strides = array<i32>} : memref<1x1x16xf32, #tpu.memory_space<vmem>>, vector<1x1x16xf32>,
    return
  }
  func.func @transform_0(%arg0: i32) -> (i32, i32) {
    %c0_i32 = arith.constant 0 : i32
    %c0_i32_0 = arith.constant 0 : i32
    return %arg0, %c0_i32 : i32, i32
  }
  func.func @transform_1(%arg0: i32) -> (i32, i32) {
    %c0_i32 = arith.constant 0 : i32
    %c0_i32_0 = arith.constant 0 : i32
    return %arg0, %c0_i32 : i32, i32
  }
  func.func @transform_2(%arg0: i32) -> (i32, i32) {
    %c0_i32 = arith.constant 0 : i32
    %c0_i32_0 = arith.constant 0 : i32
    %c0_i32_1 = arith.constant 0 : i32
    return %c0_i32, %c0_i32_0 : i32, i32
  }
  func.func @transform_3(%arg0: i32) -> (i32, i32) {
    %c0_i32 = arith.constant 0 : i32
    %c0_i32_0 = arith.constant 0 : i32
    %c0_i32_1 = arith.constant 0 : i32
    return %c0_i32, %c0_i32_0 : i32, i32
  }
  func.func @transform_4(%arg0: i32) -> (i32, i32) {
    %c0_i32 = arith.constant 0 : i32
    %c0_i32_0 = arith.constant 0 : i32
    %c0_i32_1 = arith.constant 0 : i32
    return %c0_i32, %c0_i32_0 : i32, i32
  }
  func.func @transform_5(%arg0: i32) -> (i32, i32) {
    %c0_i32 = arith.constant 0 : i32
    %c0_i32_0 = arith.constant 0 : i32
    %c0_i32_1 = arith.constant 0 : i32
    return %c0_i32, %c0_i32_0 : i32, i32
  }
  func.func @transform_6(%arg0: i32) -> (i32, i32) {
    %c0_i32 = arith.constant 0 : i32
    %c0_i32_0 = arith.constant 0 : i32
    %c0_i32_1 = arith.constant 0 : i32
    return %c0_i32, %c0_i32_0 : i32, i32
  }
  func.func @transform_7(%arg0: i32) -> (i32, i32) {
    %c0_i32 = arith.constant 0 : i32
    %c0_i32_0 = arith.constant 0 : i32
    %c0_i32_1 = arith.constant 0 : i32
    return %c0_i32, %c0_i32_0 : i32, i32
  }
  func.func @transform_8(%arg0: i32) -> (i32, i32, i32) {
    %c0_i32 = arith.constant 0 : i32
    %c0_i32_0 = arith.constant 0 : i32
    %c0_i32_1 = arith.constant 0 : i32
    return %arg0, %c0_i32, %c0_i32_0 : i32, i32, i32
  }
}

</mosaic_0001>

<bundles_post_ra>
// kernel: tpu_custom_call.1
= control target key start
LH: loop header
LB: loop body
LE: loop exit
PB: predicated region body
PF: predicated region fallthrough
CT: control target
= control target key end

     0   :  { %13 = vsyncpa [#allocation3], 0  ;;  %s6865_s0 = inlined_call_operand.hbm [shape: f32[16,1000], index: 0, kind: input, shape index: {}]   ;;  %s6866_s1 = inlined_call_operand.hbm [shape: f32[16,163], index: 1, kind: input, shape index: {}]   ;;  %s6867_s2 = inlined_call_operand.hbm [shape: bf16[1000,512], index: 2, kind: input, shape index: {}]   ;;  %s6868_s3 = inlined_call_operand.hbm [shape: bf16[163,512], index: 3, kind: input, shape index: {}]   ;;  %s6869_s4 = inlined_call_operand.hbm [shape: bf16[512,512], index: 4, kind: input, shape index: {}]   ;;  %s6870_s5 = inlined_call_operand.hbm [shape: bf16[512,512], index: 5, kind: input, shape index: {}]   ;;  %s6871_s6 = inlined_call_operand.hbm [shape: bf16[512,128], index: 6, kind: input, shape index: {}]   ;;  %s6872_s7 = inlined_call_operand.hbm [shape: f32[8,512], index: 7, kind: input, shape index: {}]   ;;  %s6873_s8 = inlined_call_operand.hbm [shape: f32[1,1,16], index: 8, kind: output, shape index: {}]  }
   0x1   :  { %14 = vsyncpa [#allocation6], 0 }
   0x2   :  { %15 = vsyncpa [#allocation9], 0 }
   0x3   :  { %16 = vsyncpa [#allocation12], 0 }
   0x4   :  { %17 = vsyncpa [#allocation15], 0 }
   0x5   :  { %18 = vsyncpa [#allocation4], 0  ;;  %s6589_s27 = smov [#allocation5]   ;;  %s6379_s9 = scalar_lea.hbm %s6866_s1, 512 }
   0x6   :  { %s36_s28 = sshll.u32 %s6589_s27, 4  ;;  %p6380_p0 = scmp.ne.s32.totalorder %s6866_s1, %s6379_s9  ;;  %s37_s28 = int_to_ptr.vmem [resolvable:$true] %s36_s28 }
   0x7   :  { %p6383_p1 = scmp.lt.u32.totalorder %s6379_s9, %s6866_s1 }
   0x9   :  { %p6385_p2 = pnand %p6383_p1, %p6380_p0 }
   0xb   :  { %6388 = shalt.err (!%p6385_p2)
}
   0xc   :  { %s6389_s14 = scalar_lea.vmem %s37_s28, 512  ;;  %p6394_p4 = scmp.lt.s32.totalorder %s37_s28, %s37_s28 }
   0xd   :  { %p6390_p3 = scmp.ne.s32.totalorder %s37_s28, %s6389_s14  ;;  %p6395_p5 = scmp.lt.s32.totalorder %s6389_s14, %s6389_s14 }
   0xf   :  { %p6396_p6 = por %p6395_p5, %p6394_p4 }
  0x11   :  { %p6397_p7 = pnand %p6396_p6, %p6390_p3 }
  0x13   :  { %6400 = shalt.err (!%p6397_p7)
}
  0x14   :  { %s6590_s15 = smov 256   ;;  %s6591_s16 = smov 16  }
  0x15   :  { %42 = dma.hbm_to_vmem [thread:$0]  %s6866_s1, 512, %s37_s28, [#allocation6], %s6590_s15, %s6590_s15, %s6591_s16  }
  0x16   :  { %s6592_s19 = smov [#allocation8]   ;;  %s6593_s21 = smov [#allocation11]  }
  0x17   :  { %s60_s20 = sshll.u32 %s6592_s19, 4  ;;  %s84_s22 = sshll.u32 %s6593_s21, 4  ;;  %s61_s20 = int_to_ptr.vmem [resolvable:$true] %s60_s20  ;;  %s85_s22 = int_to_ptr.vmem [resolvable:$true] %s84_s22 }
  0x18   :  { %s6401_s25 = scalar_lea.hbm %s6868_s3, 5376 }
  0x19   :  { %p6402_p8 = scmp.ne.s32.totalorder %s6868_s3, %s6401_s25  ;;  %p6405_p9 = scmp.lt.u32.totalorder %s6401_s25, %s6868_s3 }
  0x1b   :  { %p6407_p10 = pnand %p6405_p9, %p6402_p8 }
  0x1d   :  { %6410 = shalt.err (!%p6407_p10)
}
  0x1e   :  { %s6411_s1 = scalar_lea.vmem %s61_s20, 5376  ;;  %p6416_p12 = scmp.lt.s32.totalorder %s61_s20, %s61_s20 }
  0x1f   :  { %p6412_p11 = scmp.ne.s32.totalorder %s61_s20, %s6411_s1  ;;  %p6417_p13 = scmp.lt.s32.totalorder %s6411_s1, %s6411_s1 }
  0x21   :  { %p6418_p0 = por %p6417_p13, %p6416_p12 }
  0x23   :  { %p6419_p1 = pnand %p6418_p0, %p6412_p11 }
  0x25   :  { %6422 = shalt.err (!%p6419_p1)
}
  0x26   :  { %66 = dma.hbm_to_vmem [thread:$0]  %s6868_s3, 5376, %s61_s20, [#allocation9], %s6590_s15, %s6590_s15, %s6591_s16  }
  0x27   :  { %s6423_s12 = scalar_lea.hbm %s6870_s5, 16384 }
  0x28   :  { %p6424_p2 = scmp.ne.s32.totalorder %s6870_s5, %s6423_s12  ;;  %p6427_p3 = scmp.lt.u32.totalorder %s6423_s12, %s6870_s5 }
  0x2a   :  { %p6429_p4 = pnand %p6427_p3, %p6424_p2 }
  0x2c   :  { %6432 = shalt.err (!%p6429_p4)
}
  0x2d   :  { %s6433_s19 = scalar_lea.vmem %s85_s22, 16384  ;;  %p6438_p6 = scmp.lt.s32.totalorder %s85_s22, %s85_s22 }
  0x2e   :  { %p6434_p5 = scmp.ne.s32.totalorder %s85_s22, %s6433_s19  ;;  %p6439_p7 = scmp.lt.s32.totalorder %s6433_s19, %s6433_s19 }
  0x30   :  { %p6440_p8 = por %p6439_p7, %p6438_p6 }
  0x32   :  { %p6441_p9 = pnand %p6440_p8, %p6434_p5 }
  0x34   :  { %6444 = shalt.err (!%p6441_p9)
}
  0x35   :  { %90 = dma.hbm_to_vmem [thread:$0]  %s6870_s5, 16384, %s85_s22, [#allocation12], %s6590_s15, %s6590_s15, %s6591_s16  }
  0x36   :  { %s6594_s21 = smov [#allocation2]   ;;  %s6445_s26 = scalar_lea.hbm %s6865_s0, 2048 }
  0x37   :  { %s24_s23 = sshll.u32 %s6594_s21, 4  ;;  %p6446_p10 = scmp.ne.s32.totalorder %s6865_s0, %s6445_s26  ;;  %s25_s23 = int_to_ptr.vmem [resolvable:$true] %s24_s23 }
  0x38   :  { %p6449_p11 = scmp.lt.u32.totalorder %s6445_s26, %s6865_s0 }
  0x3a   :  { %p6451_p12 = pnand %p6449_p11, %p6446_p10 }
  0x3c   :  { %6454 = shalt.err (!%p6451_p12)
}
  0x3d   :  { %s6455_s28 = scalar_lea.vmem %s25_s23, 2048  ;;  %p6460_p0 = scmp.lt.s32.totalorder %s25_s23, %s25_s23 }
  0x3e   :  { %p6456_p13 = scmp.ne.s32.totalorder %s25_s23, %s6455_s28  ;;  %p6461_p1 = scmp.lt.s32.totalorder %s6455_s28, %s6455_s28 }
  0x40   :  { %p6462_p2 = por %p6461_p1, %p6460_p0 }
  0x42   :  { %p6463_p3 = pnand %p6462_p2, %p6456_p13 }
  0x44   :  { %6466 = shalt.err (!%p6463_p3)
}
  0x45   :  { %s6595_s5 = smov 1024   ;;  %s6596_s22 = smov 64  }
  0x46   :  { %30 = dma.hbm_to_vmem [thread:$0]  %s6865_s0, 2048, %s25_s23, [#allocation3], %s6595_s5, %s6595_s5, %s6596_s22  }
  0x47   :  { %s6597_s11 = smov [#allocation7]   ;;  %s6598_s13 = smov [#allocation10]  }
  0x48   :  { %s48_s12 = sshll.u32 %s6597_s11, 4  ;;  %s72_s14 = sshll.u32 %s6598_s13, 4  ;;  %s49_s12 = int_to_ptr.vmem [resolvable:$true] %s48_s12  ;;  %s6710_s14 = int_to_ptr.vmem [resolvable:$true] %s72_s14 }
  0x49   :  { %s6467_s19 = scalar_lea.hbm %s6867_s2, 32000 }
  0x4a   :  { %p6468_p4 = scmp.ne.s32.totalorder %s6867_s2, %s6467_s19  ;;  %p6471_p5 = scmp.lt.u32.totalorder %s6467_s19, %s6867_s2 }
  0x4c   :  { %p6473_p6 = pnand %p6471_p5, %p6468_p4 }
  0x4e   :  { %6476 = shalt.err (!%p6473_p6)
}
  0x4f   :  { %s6477_s0 = scalar_lea.vmem %s49_s12, 32000  ;;  %p6482_p8 = scmp.lt.s32.totalorder %s49_s12, %s49_s12 }
  0x50   :  { %p6478_p7 = scmp.ne.s32.totalorder %s49_s12, %s6477_s0  ;;  %p6483_p9 = scmp.lt.s32.totalorder %s6477_s0, %s6477_s0 }
  0x52   :  { %p6484_p10 = por %p6483_p9, %p6482_p8 }
  0x54   :  { %p6485_p11 = pnand %p6484_p10, %p6478_p7 }
  0x56   :  { %6488 = shalt.err (!%p6485_p11)
}
  0x57   :  { %54 = dma.hbm_to_vmem [thread:$0]  %s6867_s2, 32000, %s49_s12, [#allocation6], %s6590_s15, %s6590_s15, %s6591_s16  }
  0x58   :  { %s6489_s29 = scalar_lea.hbm %s6869_s4, 16384 }
  0x59   :  { %p6490_p12 = scmp.ne.s32.totalorder %s6869_s4, %s6489_s29  ;;  %p6493_p13 = scmp.lt.u32.totalorder %s6489_s29, %s6869_s4 }
  0x5b   :  { %p6495_p0 = pnand %p6493_p13, %p6490_p12 }
  0x5d   :  { %6498 = shalt.err (!%p6495_p0)
}
  0x5e   :  { %s6499_s9 = scalar_lea.vmem %s6710_s14, 16384  ;;  %p6504_p2 = scmp.lt.s32.totalorder %s6710_s14, %s6710_s14 }
  0x5f   :  { %p6500_p1 = scmp.ne.s32.totalorder %s6710_s14, %s6499_s9  ;;  %p6505_p3 = scmp.lt.s32.totalorder %s6499_s9, %s6499_s9 }
  0x61   :  { %p6506_p4 = por %p6505_p3, %p6504_p2 }
  0x63   :  { %p6507_p5 = pnand %p6506_p4, %p6500_p1 }
  0x65   :  { %6510 = shalt.err (!%p6507_p5)
}
  0x66   :  { %78 = dma.hbm_to_vmem [thread:$0]  %s6869_s4, 16384, %s6710_s14, [#allocation9], %s6590_s15, %s6590_s15, %s6591_s16  }
  0x67   :  { %s6599_s11 = smov [#allocation13]   ;;  %s6600_s13 = smov [#allocation14]  }
  0x68   :  { %s96_s12 = sshll.u32 %s6599_s11, 4  ;;  %s109_s17 = sshll.u32 %s6600_s13, 4  ;;  %s97_s12 = int_to_ptr.vmem [resolvable:$true] %s96_s12  ;;  %s110_s17 = int_to_ptr.vmem [resolvable:$true] %s109_s17 }
  0x69   :  { %s6511_s3 = scalar_lea.hbm %s6871_s6, 4096 }
  0x6a   :  { %p6512_p6 = scmp.ne.s32.totalorder %s6871_s6, %s6511_s3  ;;  %p6515_p7 = scmp.lt.u32.totalorder %s6511_s3, %s6871_s6 }
  0x6c   :  { %p6517_p8 = pnand %p6515_p7, %p6512_p6 }
  0x6e   :  { %6520 = shalt.err (!%p6517_p8)
}
  0x6f   :  { %s6521_s4 = scalar_lea.vmem %s97_s12, 4096  ;;  %p6526_p10 = scmp.lt.s32.totalorder %s97_s12, %s97_s12 }
  0x70   :  { %p6522_p9 = scmp.ne.s32.totalorder %s97_s12, %s6521_s4  ;;  %p6527_p11 = scmp.lt.s32.totalorder %s6521_s4, %s6521_s4 }
  0x72   :  { %p6528_p12 = por %p6527_p11, %p6526_p10 }
  0x74   :  { %p6529_p13 = pnand %p6528_p12, %p6522_p9 }
  0x76   :  { %6532 = shalt.err (!%p6529_p13)
}
  0x77   :  { %s6601_s15 = smov 4   ;;  %s6533_s26 = scalar_lea.hbm %s6872_s7, 512 }
  0x78   :  { %102 = dma.hbm_to_vmem [thread:$0]  %s6871_s6, 4096, %s97_s12, [#allocation12], %s6596_s22, %s6596_s22, %s6601_s15  }
  0x79   :  { %p6534_p0 = scmp.ne.s32.totalorder %s6872_s7, %s6533_s26  ;;  %p6537_p1 = scmp.lt.u32.totalorder %s6533_s26, %s6872_s7 }
  0x7b   :  { %p6539_p2 = pnand %p6537_p1, %p6534_p0 }
  0x7d   :  { %6542 = shalt.err (!%p6539_p2)
}
  0x7e   :  { %s6543_s28 = scalar_lea.vmem %s110_s17, 512  ;;  %p6548_p4 = scmp.lt.s32.totalorder %s110_s17, %s110_s17 }
  0x7f   :  { %p6544_p3 = scmp.ne.s32.totalorder %s110_s17, %s6543_s28  ;;  %p6549_p5 = scmp.lt.s32.totalorder %s6543_s28, %s6543_s28 }
  0x81   :  { %p6550_p6 = por %p6549_p5, %p6548_p4 }
  0x83   :  { %p6551_p7 = pnand %p6550_p6, %p6544_p3 }
  0x85   :  { %6554 = shalt.err (!%p6551_p7)
}
  0x86   :  { %112 = dma.hbm_to_vmem [thread:$0]  %s6872_s7, 512, %s110_s17, [#allocation15]  }
  0x87   :  { %6577 = dma.done.wait [#allocation3], 2048  }
  0x88   :  { %6578 = vsyncadd [#allocation3], 4294965248 }
  0x89   :  { %6579 = dma.done.wait [#allocation6], 32512  }
  0x8a   :  { %6580 = vsyncadd [#allocation6], 4294934784 }
  0x8b   :  { %6581 = dma.done.wait [#allocation9], 21760  }
  0x8c   :  { %6582 = vsyncadd [#allocation9], 4294945536 }
  0x8d   :  { %6583 = dma.done.wait [#allocation12], 20480  }
  0x8e   :  { %6584 = vsyncadd [#allocation12], 4294946816 }
  0x8f   :  { %6585 = dma.done.wait [#allocation15], 512  }
  0x90   :  { %6586 = vsyncadd [#allocation15], 4294966784  ;;  %v5523_v0 = vld [vmem:[#allocation8 + $0x4] ss:$16 sps:$4 sm:$0xff]   ;;  %v5525_v1 = vld [vmem:[#allocation8 + $0xc] ss:$16 sps:$4 sm:$0xff]  }
  0x91   :  { %698 = vmatprep.subr.bf16.mxu0 %v5523_v0  ;;  %v5527_v2 = vld [vmem:[#allocation8] ss:$16 sps:$4 sm:$0xff]   ;;  %v5528_v3 = vld [vmem:[#allocation8 + $0x8] ss:$16 sps:$4 sm:$0xff]   ;;  %741 = vmatprep.subr.bf16.mxu1 %v5525_v1  ;;  %v5529_v4 = vld [vmem:[#allocation8 + $0x24] ss:$16 sps:$4 sm:$0xff]  }
  0x92   :  { %699 = vmatpush1.bf16.msra.mxu0 %v5527_v2  ;;  %742 = vmatpush1.bf16.msra.mxu1 %v5528_v3  ;;  %v5531_v5 = vld [vmem:[#allocation8 + $0x2c] ss:$16 sps:$4 sm:$0xff]   ;;  %v5533_v6 = vld [vmem:[#allocation8 + $0x20] ss:$16 sps:$4 sm:$0xff]   ;;  %v5534_v7 = vld [vmem:[#allocation8 + $0x28] ss:$16 sps:$4 sm:$0xff]  }
  0x93   :  { %700 = vmatprep.subr.bf16.mxu0 %v5529_v4  ;;  %743 = vmatprep.subr.bf16.mxu1 %v5531_v5  ;;  %v5535_v8 = vld [vmem:[#allocation8 + $0x44] ss:$16 sps:$4 sm:$0xff]   ;;  %v5537_v9 = vld [vmem:[#allocation8 + $0x4c] ss:$16 sps:$4 sm:$0xff]   ;;  %v5539_v10 = vld [vmem:[#allocation8 + $0x40] ss:$16 sps:$4 sm:$0xff]  }
  0x94   :  { %v5540_v11 = vld [vmem:[#allocation8 + $0x48] ss:$16 sps:$4 sm:$0xff]   ;;  %v5541_v12 = vld [vmem:[#allocation8 + $0x64] ss:$16 sps:$4 sm:$0xff]   ;;  %v5543_v13 = vld [vmem:[#allocation8 + $0x6c] ss:$16 sps:$4 sm:$0xff]  }
  0x95   :  { %v5545_v14 = vld [vmem:[#allocation8 + $0x60] ss:$16 sps:$4 sm:$0xff]   ;;  %v5546_v15 = vld [vmem:[#allocation8 + $0x68] ss:$16 sps:$4 sm:$0xff]   ;;  %v5547_v16 = vld [vmem:[#allocation8 + $0x84] ss:$16 sps:$4 sm:$0xff]  }
  0x96   :  { %701 = vmatpush1.bf16.msra.mxu0 %v5533_v6  ;;  %744 = vmatpush1.bf16.msra.mxu1 %v5534_v7  ;;  %v5549_v17 = vld [vmem:[#allocation8 + $0x8c] ss:$16 sps:$4 sm:$0xff]   ;;  %v5551_v18 = vld [vmem:[#allocation8 + $0x80] ss:$16 sps:$4 sm:$0xff]   ;;  %v5552_v19 = vld [vmem:[#allocation8 + $0x88] ss:$16 sps:$4 sm:$0xff]  }
  0x97   :  { %702 = vmatprep.subr.bf16.mxu0 %v5535_v8  ;;  %745 = vmatprep.subr.bf16.mxu1 %v5537_v9  ;;  %v5553_v20 = vld [vmem:[#allocation8 + $0xa4] ss:$16 sps:$4 sm:$0xff]   ;;  %v5555_v21 = vld [vmem:[#allocation8 + $0xac] ss:$16 sps:$4 sm:$0xff]   ;;  %v5557_v22 = vld [vmem:[#allocation8 + $0xa0] ss:$16 sps:$4 sm:$0xff]  }
  0x98   :  { %v5558_v23 = vld [vmem:[#allocation8 + $0xa8] ss:$16 sps:$4 sm:$0xff]   ;;  %v5559_v24 = vld [vmem:[#allocation8 + $0xc4] ss:$16 sps:$4 sm:$0xff]   ;;  %v5561_v25 = vld [vmem:[#allocation8 + $0xcc] ss:$16 sps:$4 sm:$0xff]  }
  0x99   :  { %v5563_v26 = vld [vmem:[#allocation8 + $0xc0] ss:$16 sps:$4 sm:$0xff]   ;;  %v5564_v27 = vld [vmem:[#allocation8 + $0xc8] ss:$16 sps:$4 sm:$0xff]   ;;  %v5565_v28 = vld [vmem:[#allocation8 + $0xe4] ss:$16 sps:$4 sm:$0xff]  }
  0x9a   :  { %703 = vmatpush1.bf16.msra.mxu0 %v5539_v10  ;;  %746 = vmatpush1.bf16.msra.mxu1 %v5540_v11  ;;  %v5567_v29 = vld [vmem:[#allocation8 + $0xec] ss:$16 sps:$4 sm:$0xff]   ;;  %v5569_v30 = vld [vmem:[#allocation8 + $0xe0] ss:$16 sps:$4 sm:$0xff]   ;;  %v5570_v31 = vld [vmem:[#allocation8 + $0xe8] ss:$16 sps:$4 sm:$0xff]  }
  0x9b   :  { %704 = vmatprep.subr.bf16.mxu0 %v5541_v12  ;;  %747 = vmatprep.subr.bf16.mxu1 %v5543_v13  ;;  %v421_v32 = vld [vmem:[#allocation5 + $0x8] sm:$0xff]  ;;  %v423_v33 = vld [vmem:[#allocation5 + $0x18] sm:$0xff]  ;;  %vm678_vm0 = vcmask 285696   ;;  %v5571_v34 = vld [vmem:[#allocation8 + $0x104] ss:$16 sps:$4 sm:$0xff]   ;;  %vm682_vm1 = vcmask 1040384  }
  0x9c   :  { %v425_v35 = vpack.c.bf16 %v423_v33, %v421_v32  ;;  %v5573_v36 = vld [vmem:[#allocation8 + $0x10c] ss:$16 sps:$4 sm:$0xff]   ;;  %v466_v37 = vld [vmem:[#allocation8 + $0x140] sm:$0x33]  ;;  %vm683_vm2 = vcmask 1041408   ;;  %v6602_v39 = vmov 65535  }
  0x9d   :  { %v467_v38 = vld [vmem:[#allocation8 + $0x148] sm:$0x33]  ;;  %v684_v40 = vsel %vm682_vm1, 4294967295, %v6602_v39  ;;  %v5575_v41 = vld [vmem:[#allocation8 + $0x100] ss:$16 sps:$4 sm:$0xff]   ;;  %v4839_v45 = vcombine.high %v466_v37, %v466_v37  ;;  %v4838_v50 = vcombine.low %v466_v37, %v466_v37  ;;  %vm2034_vm3 = vcmask 850944  }
  0x9e   :  { %705 = vmatpush1.bf16.msra.mxu0 %v5545_v14  ;;  %748 = vmatpush1.bf16.msra.mxu1 %v5546_v15  ;;  %v5576_v42 = vld [vmem:[#allocation8 + $0x108] ss:$16 sps:$4 sm:$0xff]   ;;  %v5577_v43 = vld [vmem:[#allocation8 + $0x124] ss:$16 sps:$4 sm:$0xff]   ;;  %v5579_v44 = vld [vmem:[#allocation8 + $0x12c] ss:$16 sps:$4 sm:$0xff]   ;;  %v4841_v46 = vcombine.high %v467_v38, %v467_v38  ;;  %v4840_v51 = vcombine.low %v467_v38, %v467_v38 }
  0x9f   :  { %706 = vmatprep.subr.bf16.mxu0 %v5547_v16  ;;  %749 = vmatprep.subr.bf16.mxu1 %v5549_v17  ;;  %v685_v47 = vsel %vm683_vm2, %v684_v40, 0  ;;  %v5581_v48 = vld [vmem:[#allocation8 + $0x120] ss:$16 sps:$4 sm:$0xff]   ;;  %v5582_v49 = vld [vmem:[#allocation8 + $0x128] ss:$16 sps:$4 sm:$0xff]   ;;  %vm2038_vm4 = vcmask 1043456  }
  0xa0   :  { %4842 = vmatprep.mubr.msk.bf16.mxu0 %vm678_vm0, %v425_v35  ;;  %4843 = vmatprep.mubr.msk.bf16.mxu1 %vm678_vm0, %v425_v35  ;;  %v690_v52 = vand.u32 %v4839_v45, %v685_v47  ;;  %v696_v53 = vand.u32 %v4841_v46, %v685_v47  ;;  %v687_v54 = vand.u32 %v4838_v50, %v685_v47  ;;  %v420_v56 = vld [vmem:[#allocation5] sm:$0xff]  ;;  %v422_v57 = vld [vmem:[#allocation5 + $0x10] sm:$0xff]  ;;  %v5592_v59 = vld [vmem:[#allocation7 + $0xc] ss:$16 sps:$4 sm:$0xff]   ;;  %vm6604_vm5 = vmmov 0   ;;  %s6606_s7 = smov [#allocation16]  }
  0xa1   :  { %v693_v55 = vand.u32 %v4840_v51, %v685_v47  ;;  %v5589_v58 = vld [vmem:[#allocation7 + $0x4] ss:$16 sps:$4 sm:$0xff]   ;;  %v424_v60 = vpack.c.bf16 %v422_v57, %v420_v56  ;;  %v5587_v61 = vld [vmem:[#allocation7] ss:$16 sps:$4 sm:$0xff]   ;;  %v5590_v62 = vld [vmem:[#allocation7 + $0x8] ss:$16 sps:$4 sm:$0xff]  }
  0xa2   :  { %707 = vmatpush1.bf16.msra.mxu0 %v5551_v18  ;;  %750 = vmatpush1.bf16.msra.mxu1 %v5552_v19  ;;  %v5595_v63 = vld [vmem:[#allocation7 + $0x24] ss:$16 sps:$4 sm:$0xff]   ;;  %v5598_v0 = vld [vmem:[#allocation7 + $0x2c] ss:$16 sps:$4 sm:$0xff]   ;;  %v5593_v1 = vld [vmem:[#allocation7 + $0x20] ss:$16 sps:$4 sm:$0xff]  }
  0xa3   :  { %708 = vmatprep.subr.bf16.mxu0 %v5553_v20  ;;  %751 = vmatprep.subr.bf16.mxu1 %v5555_v21  ;;  %v5596_v2 = vld [vmem:[#allocation7 + $0x28] ss:$16 sps:$4 sm:$0xff]   ;;  %v5601_v3 = vld [vmem:[#allocation7 + $0x44] ss:$16 sps:$4 sm:$0xff]   ;;  %v5604_v4 = vld [vmem:[#allocation7 + $0x4c] ss:$16 sps:$4 sm:$0xff]  }
  0xa4   :  { %v5599_v5 = vld [vmem:[#allocation7 + $0x40] ss:$16 sps:$4 sm:$0xff]   ;;  %v5602_v6 = vld [vmem:[#allocation7 + $0x48] ss:$16 sps:$4 sm:$0xff]   ;;  %v5607_v7 = vld [vmem:[#allocation7 + $0x64] ss:$16 sps:$4 sm:$0xff]  }
  0xa5   :  { %v5610_v8 = vld [vmem:[#allocation7 + $0x6c] ss:$16 sps:$4 sm:$0xff]   ;;  %v5605_v9 = vld [vmem:[#allocation7 + $0x60] ss:$16 sps:$4 sm:$0xff]   ;;  %v5608_v10 = vld [vmem:[#allocation7 + $0x68] ss:$16 sps:$4 sm:$0xff]  }
  0xa6   :  { %709 = vmatpush1.bf16.msra.mxu0 %v5557_v22  ;;  %752 = vmatpush1.bf16.msra.mxu1 %v5558_v23  ;;  %v5613_v11 = vld [vmem:[#allocation7 + $0x84] ss:$16 sps:$4 sm:$0xff]   ;;  %v5616_v12 = vld [vmem:[#allocation7 + $0x8c] ss:$16 sps:$4 sm:$0xff]   ;;  %v5611_v13 = vld [vmem:[#allocation7 + $0x80] ss:$16 sps:$4 sm:$0xff]  }
  0xa7   :  { %710 = vmatprep.subr.bf16.mxu0 %v5559_v24  ;;  %753 = vmatprep.subr.bf16.mxu1 %v5561_v25  ;;  %v5614_v14 = vld [vmem:[#allocation7 + $0x88] ss:$16 sps:$4 sm:$0xff]   ;;  %v5619_v15 = vld [vmem:[#allocation7 + $0xa4] ss:$16 sps:$4 sm:$0xff]   ;;  %v5622_v16 = vld [vmem:[#allocation7 + $0xac] ss:$16 sps:$4 sm:$0xff]  }
  0xa8   :  { %v5617_v17 = vld [vmem:[#allocation7 + $0xa0] ss:$16 sps:$4 sm:$0xff]   ;;  %v5620_v18 = vld [vmem:[#allocation7 + $0xa8] ss:$16 sps:$4 sm:$0xff]   ;;  %v5625_v19 = vld [vmem:[#allocation7 + $0xc4] ss:$16 sps:$4 sm:$0xff]  }
  0xa9   :  { %v5628_v20 = vld [vmem:[#allocation7 + $0xcc] ss:$16 sps:$4 sm:$0xff]   ;;  %v5623_v21 = vld [vmem:[#allocation7 + $0xc0] ss:$16 sps:$4 sm:$0xff]   ;;  %v5626_v22 = vld [vmem:[#allocation7 + $0xc8] ss:$16 sps:$4 sm:$0xff]  }
  0xaa   :  { %711 = vmatpush1.bf16.msra.mxu0 %v5563_v26  ;;  %754 = vmatpush1.bf16.msra.mxu1 %v5564_v27  ;;  %v5631_v23 = vld [vmem:[#allocation7 + $0xe4] ss:$16 sps:$4 sm:$0xff]   ;;  %v5634_v24 = vld [vmem:[#allocation7 + $0xec] ss:$16 sps:$4 sm:$0xff]   ;;  %v5629_v25 = vld [vmem:[#allocation7 + $0xe0] ss:$16 sps:$4 sm:$0xff]  }
  0xab   :  { %712 = vmatprep.subr.bf16.mxu0 %v5565_v28  ;;  %755 = vmatprep.subr.bf16.mxu1 %v5567_v29  ;;  %v5632_v26 = vld [vmem:[#allocation7 + $0xe8] ss:$16 sps:$4 sm:$0xff]   ;;  %v5637_v29 = vld [vmem:[#allocation7 + $0x104] ss:$16 sps:$4 sm:$0xff]   ;;  %v5635_v32 = vld [vmem:[#allocation7 + $0x100] ss:$16 sps:$4 sm:$0xff]  }
  0xac   :  { %v147_v27 = vld [vmem:[#allocation2 + $0x8] sm:$0xff]  ;;  %v5649_v38 = vld [vmem:[#allocation7 + $0x144] ss:$16 sps:$4 sm:$0xff]   ;;  %v5647_v40 = vld [vmem:[#allocation7 + $0x140] ss:$16 sps:$4 sm:$0xff]   ;;  %s4785_s5 = sshll.u32 %s6606_s7, 4  ;;  %s4786_s5 = int_to_ptr.vmem [resolvable:$true] %s4785_s5 }
  0xad   :  { %v155_v28 = vld [vmem:[#allocation2 + $0x48] sm:$0xff]  ;;  %v5661_v46 = vld [vmem:[#allocation7 + $0x184] ss:$16 sps:$4 sm:$0xff]   ;;  %v5671_v56 = vld [vmem:[#allocation7 + $0x1c0] ss:$16 sps:$4 sm:$0xff]   ;;  %vm4777_vm6 = vcmask 122880   ;;  %p6560_p9 = scmp.lt.s32.totalorder %s4786_s5, %s4786_s5 }
  0xae   :  { %713 = vmatpush1.bf16.msra.mxu0 %v5569_v30  ;;  %756 = vmatpush1.bf16.msra.mxu1 %v5570_v31  ;;  %v163_v30 = vpack.c.bf16 %v155_v28, %v147_v27  ;;  %v5640_v31 = vld [vmem:[#allocation7 + $0x10c] ss:$16 sps:$4 sm:$0xff]   ;;  %v5638_v33 = vld [vmem:[#allocation7 + $0x108] ss:$16 sps:$4 sm:$0xff]   ;;  %v5667_v50 = vld [vmem:[#allocation7 + $0x1a4] ss:$16 sps:$4 sm:$0xff]  }
  0xaf   :  { %714 = vmatprep.subr.bf16.mxu0 %v5571_v34  ;;  %757 = vmatprep.subr.bf16.mxu1 %v5573_v36  ;;  %v5643_v34 = vld [vmem:[#allocation7 + $0x124] ss:$16 sps:$4 sm:$0xff]   ;;  %v5646_v35 = vld [vmem:[#allocation7 + $0x12c] ss:$16 sps:$4 sm:$0xff]   ;;  %v5641_v36 = vld [vmem:[#allocation7 + $0x120] ss:$16 sps:$4 sm:$0xff]  }
  0xb0   :  { %v5644_v37 = vld [vmem:[#allocation7 + $0x128] ss:$16 sps:$4 sm:$0xff]   ;;  %v5652_v39 = vld [vmem:[#allocation7 + $0x14c] ss:$16 sps:$4 sm:$0xff]   ;;  %v5721_v28 = vld [vmem:[#allocation7 + $0x2c4] ss:$16 sps:$4 sm:$0xff]  }
  0xb1   :  { %v5656_v45 = vld [vmem:[#allocation7 + $0x168] ss:$16 sps:$4 sm:$0xff]   ;;  %v5664_v47 = vld [vmem:[#allocation7 + $0x18c] ss:$16 sps:$4 sm:$0xff]   ;;  %s6555_s9 = scalar_lea.vmem %s4786_s5, 16  ;;  %s6559_s2 = scalar_lea.vmem %s4786_s5, 32 }
  0xb2   :  { %715 = vmatpush1.bf16.msra.mxu0 %v5575_v41  ;;  %758 = vmatpush1.bf16.msra.mxu1 %v5576_v42  ;;  %v5650_v41 = vld [vmem:[#allocation7 + $0x148] ss:$16 sps:$4 sm:$0xff]   ;;  %v5655_v42 = vld [vmem:[#allocation7 + $0x164] ss:$16 sps:$4 sm:$0xff]   ;;  %v5670_v51 = vld [vmem:[#allocation7 + $0x1ac] ss:$16 sps:$4 sm:$0xff]   ;;  %p6556_p8 = scmp.ne.s32.totalorder %s4786_s5, %s6555_s9  ;;  %p6561_p10 = scmp.lt.s32.totalorder %s6559_s2, %s6555_s9 }
  0xb3   :  { %716 = vmatprep.subr.bf16.mxu0 %v5577_v43  ;;  %759 = vmatprep.subr.bf16.mxu1 %v5579_v44  ;;  %v5658_v43 = vld [vmem:[#allocation7 + $0x16c] ss:$16 sps:$4 sm:$0xff]   ;;  %v5653_v44 = vld [vmem:[#allocation7 + $0x160] ss:$16 sps:$4 sm:$0xff]   ;;  %v5674_v57 = vld [vmem:[#allocation7 + $0x1c8] ss:$16 sps:$4 sm:$0xff]  }
  0xb4   :  { %v5716_v27 = vld [vmem:[#allocation7 + $0x2a8] ss:$16 sps:$4 sm:$0xff]   ;;  %p6562_p11 = por %p6561_p10, %p6560_p9 }
  0xb6   :  { %717 = vmatpush1.bf16.msra.mxu0 %v5581_v48  ;;  %760 = vmatpush1.bf16.msra.mxu1 %v5582_v49  ;;  %v5659_v48 = vld [vmem:[#allocation7 + $0x180] ss:$16 sps:$4 sm:$0xff]   ;;  %v5662_v49 = vld [vmem:[#allocation7 + $0x188] ss:$16 sps:$4 sm:$0xff]   ;;  %p6563_p12 = pnand %p6562_p11, %p6556_p8 }
  0xb7   :  { %718 = vmatprep.subr.bf16.mxu0 %v690_v52  ;;  %761 = vmatprep.subr.bf16.mxu1 %v696_v53  ;;  %v5665_v52 = vld [vmem:[#allocation7 + $0x1a0] ss:$16 sps:$4 sm:$0xff]   ;;  %v5668_v53 = vld [vmem:[#allocation7 + $0x1a8] ss:$16 sps:$4 sm:$0xff]  }
  0xba   :  { %719 = vmatpush1.bf16.msra.mxu0 %v687_v54  ;;  %762 = vmatpush1.bf16.msra.mxu1 %v693_v55  ;;  %v5673_v54 = vld [vmem:[#allocation7 + $0x1c4] ss:$16 sps:$4 sm:$0xff]   ;;  %v5676_v55 = vld [vmem:[#allocation7 + $0x1cc] ss:$16 sps:$4 sm:$0xff]  }
  0xbb   :  { %2051 = vmatprep.subr.bf16.mxu0 %v5589_v58  ;;  %2223 = vmatprep.subr.bf16.mxu1 %v5592_v59  ;;  %v5679_v58 = vld [vmem:[#allocation7 + $0x1e4] ss:$16 sps:$4 sm:$0xff]   ;;  %v5682_v59 = vld [vmem:[#allocation7 + $0x1ec] ss:$16 sps:$4 sm:$0xff]  }
  0xbd   :  { %731 = vmatmul.mubr.bf16.vlgmr.msra.gmra.mrb[0].mxu0 %v424_v60  ;;  %774 = vmatmul.mubr.bf16.vlgmr.msra.gmra.mrb[0].mxu1 %v424_v60  ;;  %v5677_v60 = vld [vmem:[#allocation7 + $0x1e0] ss:$16 sps:$4 sm:$0xff]  }
  0xbe   :  { %2052 = vmatpush1.bf16.msra.mxu0 %v5587_v61  ;;  %2224 = vmatpush1.bf16.msra.mxu1 %v5590_v62  ;;  %v5680_v61 = vld [vmem:[#allocation7 + $0x1e8] ss:$16 sps:$4 sm:$0xff]   ;;  %v146_v62 = vld [vmem:[#allocation2] sm:$0xff] }
  0xbf   :  { %2053 = vmatprep.subr.bf16.mxu0 %v5595_v63  ;;  %2225 = vmatprep.subr.bf16.mxu1 %v5598_v0  ;;  %v154_v63 = vld [vmem:[#allocation2 + $0x40] sm:$0xff] }
  0xc0   :  { %2083 = vmatprep.mubr.bf16.mxu0 %v163_v30  ;;  %2255 = vmatprep.mubr.bf16.mxu1 %v163_v30  ;;  %v5685_v0 = vld [vmem:[#allocation7 + $0x204] ss:$16 sps:$4 sm:$0xff]   ;;  %v5719_v30 = vld [vmem:[#allocation7 + $0x2c0] ss:$16 sps:$4 sm:$0xff]  }
  0xc2   :  { %2054 = vmatpush1.bf16.msra.mxu0 %v5593_v1  ;;  %2226 = vmatpush1.bf16.msra.mxu1 %v5596_v2  ;;  %v5688_v1 = vld [vmem:[#allocation7 + $0x20c] ss:$16 sps:$4 sm:$0xff]   ;;  %v162_v2 = vpack.c.bf16 %v154_v63, %v146_v62  ;;  %v5767_v62 = vld [vmem:[#allocation7 + $0x3c0] ss:$16 sps:$4 sm:$0xff]   ;;  %v5770_v63 = vld [vmem:[#allocation7 + $0x3c8] ss:$16 sps:$4 sm:$0xff]  }
  0xc3   :  { %2055 = vmatprep.subr.bf16.mxu0 %v5601_v3  ;;  %2227 = vmatprep.subr.bf16.mxu1 %v5604_v4  ;;  %v5683_v3 = vld [vmem:[#allocation7 + $0x200] ss:$16 sps:$4 sm:$0xff]   ;;  %v5686_v4 = vld [vmem:[#allocation7 + $0x208] ss:$16 sps:$4 sm:$0xff]  }
  0xc6   :  { %2056 = vmatpush1.bf16.msra.mxu0 %v5599_v5  ;;  %2228 = vmatpush1.bf16.msra.mxu1 %v5602_v6  ;;  %v5691_v5 = vld [vmem:[#allocation7 + $0x224] ss:$16 sps:$4 sm:$0xff]   ;;  %v5694_v6 = vld [vmem:[#allocation7 + $0x22c] ss:$16 sps:$4 sm:$0xff]  }
  0xc7   :  { %2057 = vmatprep.subr.bf16.mxu0 %v5607_v7  ;;  %2229 = vmatprep.subr.bf16.mxu1 %v5610_v8  ;;  %v5689_v7 = vld [vmem:[#allocation7 + $0x220] ss:$16 sps:$4 sm:$0xff]   ;;  %v5692_v8 = vld [vmem:[#allocation7 + $0x228] ss:$16 sps:$4 sm:$0xff]  }
  0xca   :  { %2058 = vmatpush1.bf16.msra.mxu0 %v5605_v9  ;;  %2230 = vmatpush1.bf16.msra.mxu1 %v5608_v10  ;;  %v5697_v9 = vld [vmem:[#allocation7 + $0x244] ss:$16 sps:$4 sm:$0xff]   ;;  %v5700_v10 = vld [vmem:[#allocation7 + $0x24c] ss:$16 sps:$4 sm:$0xff]  }
  0xcb   :  { %2059 = vmatprep.subr.bf16.mxu0 %v5613_v11  ;;  %2231 = vmatprep.subr.bf16.mxu1 %v5616_v12  ;;  %v5695_v11 = vld [vmem:[#allocation7 + $0x240] ss:$16 sps:$4 sm:$0xff]   ;;  %v5698_v12 = vld [vmem:[#allocation7 + $0x248] ss:$16 sps:$4 sm:$0xff]  }
  0xce   :  { %2060 = vmatpush1.bf16.msra.mxu0 %v5611_v13  ;;  %2232 = vmatpush1.bf16.msra.mxu1 %v5614_v14  ;;  %v149_v13 = vld [vmem:[#allocation2 + $0x18] sm:$0xff] }
  0xcf   :  { %2061 = vmatprep.subr.bf16.mxu0 %v5619_v15  ;;  %2233 = vmatprep.subr.bf16.mxu1 %v5622_v16  ;;  %v157_v14 = vld [vmem:[#allocation2 + $0x58] sm:$0xff]  ;;  %v5703_v15 = vld [vmem:[#allocation7 + $0x264] ss:$16 sps:$4 sm:$0xff]  }
  0xd0   :  { %v165_v16 = vpack.c.bf16 %v157_v14, %v149_v13  ;;  %v5787_v13 = vld [vmem:[#allocation7 + $0x424] ss:$16 sps:$4 sm:$0xff]   ;;  %v5790_v14 = vld [vmem:[#allocation7 + $0x42c] ss:$16 sps:$4 sm:$0xff]  }
  0xd2   :  { %2062 = vmatpush1.bf16.msra.mxu0 %v5617_v17  ;;  %2234 = vmatpush1.bf16.msra.mxu1 %v5620_v18  ;;  %v5706_v17 = vld [vmem:[#allocation7 + $0x26c] ss:$16 sps:$4 sm:$0xff]   ;;  %v5701_v18 = vld [vmem:[#allocation7 + $0x260] ss:$16 sps:$4 sm:$0xff]  }
  0xd3   :  { %2063 = vmatprep.subr.bf16.mxu0 %v5625_v19  ;;  %2235 = vmatprep.subr.bf16.mxu1 %v5628_v20  ;;  %v5704_v19 = vld [vmem:[#allocation7 + $0x268] ss:$16 sps:$4 sm:$0xff]   ;;  %v5709_v20 = vld [vmem:[#allocation7 + $0x284] ss:$16 sps:$4 sm:$0xff]  }
  0xd6   :  { %2064 = vmatpush1.bf16.msra.mxu0 %v5623_v21  ;;  %2236 = vmatpush1.bf16.msra.mxu1 %v5626_v22  ;;  %v5712_v21 = vld [vmem:[#allocation7 + $0x28c] ss:$16 sps:$4 sm:$0xff]   ;;  %v5707_v22 = vld [vmem:[#allocation7 + $0x280] ss:$16 sps:$4 sm:$0xff]  }
  0xd7   :  { %2065 = vmatprep.subr.bf16.mxu0 %v5631_v23  ;;  %2237 = vmatprep.subr.bf16.mxu1 %v5634_v24  ;;  %v5710_v23 = vld [vmem:[#allocation7 + $0x288] ss:$16 sps:$4 sm:$0xff]   ;;  %v5715_v24 = vld [vmem:[#allocation7 + $0x2a4] ss:$16 sps:$4 sm:$0xff]  }
  0xda   :  { %2066 = vmatpush1.bf16.msra.mxu0 %v5629_v25  ;;  %2238 = vmatpush1.bf16.msra.mxu1 %v5632_v26  ;;  %v5718_v25 = vld [vmem:[#allocation7 + $0x2ac] ss:$16 sps:$4 sm:$0xff]   ;;  %v5713_v26 = vld [vmem:[#allocation7 + $0x2a0] ss:$16 sps:$4 sm:$0xff]  }
  0xdb   :  { %2067 = vmatprep.subr.bf16.mxu0 %v5637_v29  ;;  %2239 = vmatprep.subr.bf16.mxu1 %v5640_v31  ;;  %v5724_v29 = vld [vmem:[#allocation7 + $0x2cc] ss:$16 sps:$4 sm:$0xff]   ;;  %v5722_v31 = vld [vmem:[#allocation7 + $0x2c8] ss:$16 sps:$4 sm:$0xff]  }
  0xde   :  { %2068 = vmatpush1.bf16.msra.mxu0 %v5635_v32  ;;  %2240 = vmatpush1.bf16.msra.mxu1 %v5638_v33  ;;  %v5727_v32 = vld [vmem:[#allocation7 + $0x2e4] ss:$16 sps:$4 sm:$0xff]   ;;  %v5730_v33 = vld [vmem:[#allocation7 + $0x2ec] ss:$16 sps:$4 sm:$0xff]  }
  0xdf   :  { %2069 = vmatprep.subr.bf16.mxu0 %v5643_v34  ;;  %2241 = vmatprep.subr.bf16.mxu1 %v5646_v35  ;;  %v5725_v34 = vld [vmem:[#allocation7 + $0x2e0] ss:$16 sps:$4 sm:$0xff]   ;;  %v5728_v35 = vld [vmem:[#allocation7 + $0x2e8] ss:$16 sps:$4 sm:$0xff]  }
  0xe2   :  { %2070 = vmatpush1.bf16.msra.mxu0 %v5641_v36  ;;  %2242 = vmatpush1.bf16.msra.mxu1 %v5644_v37  ;;  %v5733_v36 = vld [vmem:[#allocation7 + $0x304] ss:$16 sps:$4 sm:$0xff]   ;;  %v5736_v37 = vld [vmem:[#allocation7 + $0x30c] ss:$16 sps:$4 sm:$0xff]  }
  0xe3   :  { %2071 = vmatprep.subr.bf16.mxu0 %v5649_v38  ;;  %2243 = vmatprep.subr.bf16.mxu1 %v5652_v39  ;;  %v5731_v38 = vld [vmem:[#allocation7 + $0x300] ss:$16 sps:$4 sm:$0xff]   ;;  %v5734_v39 = vld [vmem:[#allocation7 + $0x308] ss:$16 sps:$4 sm:$0xff]  }
  0xe6   :  { %2072 = vmatpush1.bf16.msra.mxu0 %v5647_v40  ;;  %2244 = vmatpush1.bf16.msra.mxu1 %v5650_v41  ;;  %v5739_v40 = vld [vmem:[#allocation7 + $0x324] ss:$16 sps:$4 sm:$0xff]   ;;  %v5742_v41 = vld [vmem:[#allocation7 + $0x32c] ss:$16 sps:$4 sm:$0xff]  }
  0xe7   :  { %2073 = vmatprep.subr.bf16.mxu0 %v5655_v42  ;;  %2245 = vmatprep.subr.bf16.mxu1 %v5658_v43  ;;  %v5737_v42 = vld [vmem:[#allocation7 + $0x320] ss:$16 sps:$4 sm:$0xff]   ;;  %v5740_v43 = vld [vmem:[#allocation7 + $0x328] ss:$16 sps:$4 sm:$0xff]  }
  0xea   :  { %2074 = vmatpush1.bf16.msra.mxu0 %v5653_v44  ;;  %2246 = vmatpush1.bf16.msra.mxu1 %v5656_v45  ;;  %v5745_v44 = vld [vmem:[#allocation7 + $0x344] ss:$16 sps:$4 sm:$0xff]   ;;  %v5748_v45 = vld [vmem:[#allocation7 + $0x34c] ss:$16 sps:$4 sm:$0xff]  }
  0xeb   :  { %2075 = vmatprep.subr.bf16.mxu0 %v5661_v46  ;;  %2247 = vmatprep.subr.bf16.mxu1 %v5664_v47  ;;  %v5743_v46 = vld [vmem:[#allocation7 + $0x340] ss:$16 sps:$4 sm:$0xff]   ;;  %v5746_v47 = vld [vmem:[#allocation7 + $0x348] ss:$16 sps:$4 sm:$0xff]  }
  0xee   :  { %2076 = vmatpush1.bf16.msra.mxu0 %v5659_v48  ;;  %2248 = vmatpush1.bf16.msra.mxu1 %v5662_v49  ;;  %v5751_v48 = vld [vmem:[#allocation7 + $0x364] ss:$16 sps:$4 sm:$0xff]   ;;  %v5754_v49 = vld [vmem:[#allocation7 + $0x36c] ss:$16 sps:$4 sm:$0xff]  }
  0xef   :  { %2077 = vmatprep.subr.bf16.mxu0 %v5667_v50  ;;  %2249 = vmatprep.subr.bf16.mxu1 %v5670_v51  ;;  %v5749_v50 = vld [vmem:[#allocation7 + $0x360] ss:$16 sps:$4 sm:$0xff]   ;;  %v5752_v51 = vld [vmem:[#allocation7 + $0x368] ss:$16 sps:$4 sm:$0xff]  }
  0xf2   :  { %2078 = vmatpush1.bf16.msra.mxu0 %v5665_v52  ;;  %2250 = vmatpush1.bf16.msra.mxu1 %v5668_v53  ;;  %v5757_v52 = vld [vmem:[#allocation7 + $0x384] ss:$16 sps:$4 sm:$0xff]   ;;  %v5760_v53 = vld [vmem:[#allocation7 + $0x38c] ss:$16 sps:$4 sm:$0xff]  }
  0xf3   :  { %2079 = vmatprep.subr.bf16.mxu0 %v5673_v54  ;;  %2251 = vmatprep.subr.bf16.mxu1 %v5676_v55  ;;  %v5755_v54 = vld [vmem:[#allocation7 + $0x380] ss:$16 sps:$4 sm:$0xff]   ;;  %v5758_v55 = vld [vmem:[#allocation7 + $0x388] ss:$16 sps:$4 sm:$0xff]  }
  0xf6   :  { %2080 = vmatpush1.bf16.msra.mxu0 %v5671_v56  ;;  %2252 = vmatpush1.bf16.msra.mxu1 %v5674_v57  ;;  %v5763_v56 = vld [vmem:[#allocation7 + $0x3a4] ss:$16 sps:$4 sm:$0xff]   ;;  %v5766_v57 = vld [vmem:[#allocation7 + $0x3ac] ss:$16 sps:$4 sm:$0xff]  }
  0xf7   :  { %2081 = vmatprep.subr.bf16.mxu0 %v5679_v58  ;;  %2253 = vmatprep.subr.bf16.mxu1 %v5682_v59  ;;  %v5761_v58 = vld [vmem:[#allocation7 + $0x3a0] ss:$16 sps:$4 sm:$0xff]   ;;  %v5764_v59 = vld [vmem:[#allocation7 + $0x3a8] ss:$16 sps:$4 sm:$0xff]  }
  0xfa   :  { %2082 = vmatpush1.bf16.msra.mxu0 %v5677_v60  ;;  %2254 = vmatpush1.bf16.msra.mxu1 %v5680_v61  ;;  %v5769_v60 = vld [vmem:[#allocation7 + $0x3c4] ss:$16 sps:$4 sm:$0xff]   ;;  %v5772_v61 = vld [vmem:[#allocation7 + $0x3cc] ss:$16 sps:$4 sm:$0xff]  }
  0xfb   :  { %2094 = vmatprep.subr.bf16.mxu0 %v5685_v0  ;;  %2266 = vmatprep.subr.bf16.mxu1 %v5688_v1  ;;  %v5775_v0 = vld [vmem:[#allocation7 + $0x3e4] ss:$16 sps:$4 sm:$0xff]   ;;  %v5778_v1 = vld [vmem:[#allocation7 + $0x3ec] ss:$16 sps:$4 sm:$0xff]  }
  0xfd   :  { %2084 = vmatmul.mubr.bf16.vlgmr.msra.gmra.mrb[0].mxu0 %v162_v2  ;;  %2256 = vmatmul.mubr.bf16.vlgmr.msra.gmra.mrb[0].mxu1 %v162_v2  ;;  %v5773_v2 = vld [vmem:[#allocation7 + $0x3e0] ss:$16 sps:$4 sm:$0xff]  }
  0xfe   :  { %2095 = vmatpush1.bf16.msra.mxu0 %v5683_v3  ;;  %2267 = vmatpush1.bf16.msra.mxu1 %v5686_v4  ;;  %v5776_v3 = vld [vmem:[#allocation7 + $0x3e8] ss:$16 sps:$4 sm:$0xff]   ;;  %v148_v4 = vld [vmem:[#allocation2 + $0x10] sm:$0xff] }
  0xff   :  { %2096 = vmatprep.subr.bf16.mxu0 %v5691_v5  ;;  %2268 = vmatprep.subr.bf16.mxu1 %v5694_v6  ;;  %v156_v5 = vld [vmem:[#allocation2 + $0x50] sm:$0xff] }
 0x100   :  { %2126 = vmatprep.mubr.bf16.mxu0 %v165_v16  ;;  %2298 = vmatprep.mubr.bf16.mxu1 %v165_v16  ;;  %v5781_v6 = vld [vmem:[#allocation7 + $0x404] ss:$16 sps:$4 sm:$0xff]   ;;  %v5785_v16 = vld [vmem:[#allocation7 + $0x420] ss:$16 sps:$4 sm:$0xff]  }
 0x102   :  { %2097 = vmatpush1.bf16.msra.mxu0 %v5689_v7  ;;  %2269 = vmatpush1.bf16.msra.mxu1 %v5692_v8  ;;  %v5784_v7 = vld [vmem:[#allocation7 + $0x40c] ss:$16 sps:$4 sm:$0xff]  }
 0x103   :  { %2098 = vmatprep.subr.bf16.mxu0 %v5697_v9  ;;  %2270 = vmatprep.subr.bf16.mxu1 %v5700_v10  ;;  %v151_v8 = vld [vmem:[#allocation2 + $0x28] sm:$0xff]  ;;  %v164_v9 = vpack.c.bf16 %v156_v5, %v148_v4  ;;  %v5863_v4 = vld [vmem:[#allocation7 + $0x5c0] ss:$16 sps:$4 sm:$0xff]  }
 0x104   :  { %v159_v10 = vld [vmem:[#allocation2 + $0x68] sm:$0xff] }
 0x105   :  { %v5866_v5 = vld [vmem:[#allocation7 + $0x5c8] ss:$16 sps:$4 sm:$0xff]  }
 0x106   :  { %2099 = vmatpush1.bf16.msra.mxu0 %v5695_v11  ;;  %2271 = vmatpush1.bf16.msra.mxu1 %v5698_v12  ;;  %v5779_v11 = vld [vmem:[#allocation7 + $0x400] ss:$16 sps:$4 sm:$0xff]   ;;  %v5782_v12 = vld [vmem:[#allocation7 + $0x408] ss:$16 sps:$4 sm:$0xff]  }
 0x107   :  { %2100 = vmatprep.subr.bf16.mxu0 %v5703_v15  ;;  %2272 = vmatprep.subr.bf16.mxu1 %v5706_v17  ;;  %v167_v15 = vpack.c.bf16 %v159_v10, %v151_v8  ;;  %v5788_v17 = vld [vmem:[#allocation7 + $0x428] ss:$16 sps:$4 sm:$0xff]   ;;  %v5869_v8 = vld [vmem:[#allocation7 + $0x5e0] ss:$16 sps:$4 sm:$0xff]   ;;  %v5877_v10 = vld [vmem:[#allocation7 + $0x604] ss:$16 sps:$4 sm:$0xff]  }
 0x10a   :  { %2101 = vmatpush1.bf16.msra.mxu0 %v5701_v18  ;;  %2273 = vmatpush1.bf16.msra.mxu1 %v5704_v19  ;;  %v5793_v18 = vld [vmem:[#allocation7 + $0x444] ss:$16 sps:$4 sm:$0xff]   ;;  %v5796_v19 = vld [vmem:[#allocation7 + $0x44c] ss:$16 sps:$4 sm:$0xff]  }
 0x10b   :  { %2102 = vmatprep.subr.bf16.mxu0 %v5709_v20  ;;  %2274 = vmatprep.subr.bf16.mxu1 %v5712_v21  ;;  %v5791_v20 = vld [vmem:[#allocation7 + $0x440] ss:$16 sps:$4 sm:$0xff]   ;;  %v5794_v21 = vld [vmem:[#allocation7 + $0x448] ss:$16 sps:$4 sm:$0xff]  }
 0x10e   :  { %2103 = vmatpush1.bf16.msra.mxu0 %v5707_v22  ;;  %2275 = vmatpush1.bf16.msra.mxu1 %v5710_v23  ;;  %v5799_v22 = vld [vmem:[#allocation7 + $0x464] ss:$16 sps:$4 sm:$0xff]   ;;  %v5802_v23 = vld [vmem:[#allocation7 + $0x46c] ss:$16 sps:$4 sm:$0xff]  }
 0x10f   :  { %2104 = vmatprep.subr.bf16.mxu0 %v5715_v24  ;;  %2276 = vmatprep.subr.bf16.mxu1 %v5718_v25  ;;  %v5797_v24 = vld [vmem:[#allocation7 + $0x460] ss:$16 sps:$4 sm:$0xff]   ;;  %v5800_v25 = vld [vmem:[#allocation7 + $0x468] ss:$16 sps:$4 sm:$0xff]  }
 0x112   :  { %2105 = vmatpush1.bf16.msra.mxu0 %v5713_v26  ;;  %2277 = vmatpush1.bf16.msra.mxu1 %v5716_v27  ;;  %v5805_v26 = vld [vmem:[#allocation7 + $0x484] ss:$16 sps:$4 sm:$0xff]   ;;  %v5808_v27 = vld [vmem:[#allocation7 + $0x48c] ss:$16 sps:$4 sm:$0xff]  }
 0x113   :  { %2106 = vmatprep.subr.bf16.mxu0 %v5721_v28  ;;  %2278 = vmatprep.subr.bf16.mxu1 %v5724_v29  ;;  %v5803_v28 = vld [vmem:[#allocation7 + $0x480] ss:$16 sps:$4 sm:$0xff]   ;;  %v5806_v29 = vld [vmem:[#allocation7 + $0x488] ss:$16 sps:$4 sm:$0xff]  }
 0x116   :  { %2107 = vmatpush1.bf16.msra.mxu0 %v5719_v30  ;;  %2279 = vmatpush1.bf16.msra.mxu1 %v5722_v31  ;;  %v5811_v30 = vld [vmem:[#allocation7 + $0x4a4] ss:$16 sps:$4 sm:$0xff]   ;;  %v5814_v31 = vld [vmem:[#allocation7 + $0x4ac] ss:$16 sps:$4 sm:$0xff]  }
 0x117   :  { %2108 = vmatprep.subr.bf16.mxu0 %v5727_v32  ;;  %2280 = vmatprep.subr.bf16.mxu1 %v5730_v33  ;;  %v5809_v32 = vld [vmem:[#allocation7 + $0x4a0] ss:$16 sps:$4 sm:$0xff]   ;;  %v5812_v33 = vld [vmem:[#allocation7 + $0x4a8] ss:$16 sps:$4 sm:$0xff]  }
 0x11a   :  { %2109 = vmatpush1.bf16.msra.mxu0 %v5725_v34  ;;  %2281 = vmatpush1.bf16.msra.mxu1 %v5728_v35  ;;  %v5817_v34 = vld [vmem:[#allocation7 + $0x4c4] ss:$16 sps:$4 sm:$0xff]   ;;  %v5820_v35 = vld [vmem:[#allocation7 + $0x4cc] ss:$16 sps:$4 sm:$0xff]  }
 0x11b   :  { %2110 = vmatprep.subr.bf16.mxu0 %v5733_v36  ;;  %2282 = vmatprep.subr.bf16.mxu1 %v5736_v37  ;;  %v5815_v36 = vld [vmem:[#allocation7 + $0x4c0] ss:$16 sps:$4 sm:$0xff]   ;;  %v5818_v37 = vld [vmem:[#allocation7 + $0x4c8] ss:$16 sps:$4 sm:$0xff]  }
 0x11e   :  { %2111 = vmatpush1.bf16.msra.mxu0 %v5731_v38  ;;  %2283 = vmatpush1.bf16.msra.mxu1 %v5734_v39  ;;  %v5823_v38 = vld [vmem:[#allocation7 + $0x4e4] ss:$16 sps:$4 sm:$0xff]   ;;  %v5826_v39 = vld [vmem:[#allocation7 + $0x4ec] ss:$16 sps:$4 sm:$0xff]  }
 0x11f   :  { %2112 = vmatprep.subr.bf16.mxu0 %v5739_v40  ;;  %2284 = vmatprep.subr.bf16.mxu1 %v5742_v41  ;;  %v5821_v40 = vld [vmem:[#allocation7 + $0x4e0] ss:$16 sps:$4 sm:$0xff]   ;;  %v5824_v41 = vld [vmem:[#allocation7 + $0x4e8] ss:$16 sps:$4 sm:$0xff]  }
 0x122   :  { %2113 = vmatpush1.bf16.msra.mxu0 %v5737_v42  ;;  %2285 = vmatpush1.bf16.msra.mxu1 %v5740_v43  ;;  %v5829_v42 = vld [vmem:[#allocation7 + $0x504] ss:$16 sps:$4 sm:$0xff]   ;;  %v5832_v43 = vld [vmem:[#allocation7 + $0x50c] ss:$16 sps:$4 sm:$0xff]  }
 0x123   :  { %2114 = vmatprep.subr.bf16.mxu0 %v5745_v44  ;;  %2286 = vmatprep.subr.bf16.mxu1 %v5748_v45  ;;  %v5827_v44 = vld [vmem:[#allocation7 + $0x500] ss:$16 sps:$4 sm:$0xff]   ;;  %v5830_v45 = vld [vmem:[#allocation7 + $0x508] ss:$16 sps:$4 sm:$0xff]  }
 0x126   :  { %2115 = vmatpush1.bf16.msra.mxu0 %v5743_v46  ;;  %2287 = vmatpush1.bf16.msra.mxu1 %v5746_v47  ;;  %v5835_v46 = vld [vmem:[#allocation7 + $0x524] ss:$16 sps:$4 sm:$0xff]   ;;  %v5838_v47 = vld [vmem:[#allocation7 + $0x52c] ss:$16 sps:$4 sm:$0xff]  }
 0x127   :  { %2116 = vmatprep.subr.bf16.mxu0 %v5751_v48  ;;  %2288 = vmatprep.subr.bf16.mxu1 %v5754_v49  ;;  %v5833_v48 = vld [vmem:[#allocation7 + $0x520] ss:$16 sps:$4 sm:$0xff]   ;;  %v5836_v49 = vld [vmem:[#allocation7 + $0x528] ss:$16 sps:$4 sm:$0xff]  }
 0x12a   :  { %2117 = vmatpush1.bf16.msra.mxu0 %v5749_v50  ;;  %2289 = vmatpush1.bf16.msra.mxu1 %v5752_v51  ;;  %v5841_v50 = vld [vmem:[#allocation7 + $0x544] ss:$16 sps:$4 sm:$0xff]   ;;  %v5844_v51 = vld [vmem:[#allocation7 + $0x54c] ss:$16 sps:$4 sm:$0xff]  }
 0x12b   :  { %2118 = vmatprep.subr.bf16.mxu0 %v5757_v52  ;;  %2290 = vmatprep.subr.bf16.mxu1 %v5760_v53  ;;  %v5839_v52 = vld [vmem:[#allocation7 + $0x540] ss:$16 sps:$4 sm:$0xff]   ;;  %v5842_v53 = vld [vmem:[#allocation7 + $0x548] ss:$16 sps:$4 sm:$0xff]  }
 0x12e   :  { %2119 = vmatpush1.bf16.msra.mxu0 %v5755_v54  ;;  %2291 = vmatpush1.bf16.msra.mxu1 %v5758_v55  ;;  %v5847_v54 = vld [vmem:[#allocation7 + $0x564] ss:$16 sps:$4 sm:$0xff]   ;;  %v5850_v55 = vld [vmem:[#allocation7 + $0x56c] ss:$16 sps:$4 sm:$0xff]  }
 0x12f   :  { %2120 = vmatprep.subr.bf16.mxu0 %v5763_v56  ;;  %2292 = vmatprep.subr.bf16.mxu1 %v5766_v57  ;;  %v5845_v56 = vld [vmem:[#allocation7 + $0x560] ss:$16 sps:$4 sm:$0xff]   ;;  %v5848_v57 = vld [vmem:[#allocation7 + $0x568] ss:$16 sps:$4 sm:$0xff]  }
 0x132   :  { %2121 = vmatpush1.bf16.msra.mxu0 %v5761_v58  ;;  %2293 = vmatpush1.bf16.msra.mxu1 %v5764_v59  ;;  %v5853_v58 = vld [vmem:[#allocation7 + $0x584] ss:$16 sps:$4 sm:$0xff]   ;;  %v5856_v59 = vld [vmem:[#allocation7 + $0x58c] ss:$16 sps:$4 sm:$0xff]  }
 0x133   :  { %2122 = vmatprep.subr.bf16.mxu0 %v5769_v60  ;;  %2294 = vmatprep.subr.bf16.mxu1 %v5772_v61  ;;  %v5851_v60 = vld [vmem:[#allocation7 + $0x580] ss:$16 sps:$4 sm:$0xff]   ;;  %v5854_v61 = vld [vmem:[#allocation7 + $0x588] ss:$16 sps:$4 sm:$0xff]  }
 0x136   :  { %2123 = vmatpush1.bf16.msra.mxu0 %v5767_v62  ;;  %2295 = vmatpush1.bf16.msra.mxu1 %v5770_v63  ;;  %v5859_v62 = vld [vmem:[#allocation7 + $0x5a4] ss:$16 sps:$4 sm:$0xff]   ;;  %v5862_v63 = vld [vmem:[#allocation7 + $0x5ac] ss:$16 sps:$4 sm:$0xff]  }
 0x137   :  { %2124 = vmatprep.subr.bf16.mxu0 %v5775_v0  ;;  %2296 = vmatprep.subr.bf16.mxu1 %v5778_v1  ;;  %v5857_v0 = vld [vmem:[#allocation7 + $0x5a0] ss:$16 sps:$4 sm:$0xff]   ;;  %v5860_v1 = vld [vmem:[#allocation7 + $0x5a8] ss:$16 sps:$4 sm:$0xff]  }
 0x13a   :  { %2125 = vmatpush1.bf16.msra.mxu0 %v5773_v2  ;;  %2297 = vmatpush1.bf16.msra.mxu1 %v5776_v3  ;;  %v5865_v2 = vld [vmem:[#allocation7 + $0x5c4] ss:$16 sps:$4 sm:$0xff]   ;;  %v5868_v3 = vld [vmem:[#allocation7 + $0x5cc] ss:$16 sps:$4 sm:$0xff]  }
 0x13b   :  { %2137 = vmatprep.subr.bf16.mxu0 %v5781_v6  ;;  %2309 = vmatprep.subr.bf16.mxu1 %v5784_v7  ;;  %v5871_v6 = vld [vmem:[#allocation7 + $0x5e4] ss:$16 sps:$4 sm:$0xff]   ;;  %v5874_v7 = vld [vmem:[#allocation7 + $0x5ec] ss:$16 sps:$4 sm:$0xff]  }
 0x13d   :  { %2127 = vmatmul.mubr.bf16.vlgmr.msra.gmra.mrb[0].mxu0 %v164_v9  ;;  %2299 = vmatmul.mubr.bf16.vlgmr.msra.gmra.mrb[0].mxu1 %v164_v9  ;;  %v5872_v9 = vld [vmem:[#allocation7 + $0x5e8] ss:$16 sps:$4 sm:$0xff]  }
 0x13e   :  { %2138 = vmatpush1.bf16.msra.mxu0 %v5779_v11  ;;  %2310 = vmatpush1.bf16.msra.mxu1 %v5782_v12  ;;  %v150_v11 = vld [vmem:[#allocation2 + $0x20] sm:$0xff] }
 0x13f   :  { %2139 = vmatprep.subr.bf16.mxu0 %v5787_v13  ;;  %2311 = vmatprep.subr.bf16.mxu1 %v5790_v14  ;;  %v158_v12 = vld [vmem:[#allocation2 + $0x60] sm:$0xff]  ;;  %v5880_v13 = vld [vmem:[#allocation7 + $0x60c] ss:$16 sps:$4 sm:$0xff]  }
 0x140   :  { %2169 = vmatprep.mubr.bf16.mxu0 %v167_v15  ;;  %2341 = vmatprep.mubr.bf16.mxu1 %v167_v15  ;;  %v5875_v14 = vld [vmem:[#allocation7 + $0x600] ss:$16 sps:$4 sm:$0xff]   ;;  %v166_v15 = vpack.c.bf16 %v158_v12, %v150_v11 }
 0x142   :  { %2140 = vmatpush1.bf16.msra.mxu0 %v5785_v16  ;;  %2312 = vmatpush1.bf16.msra.mxu1 %v5788_v17  ;;  %v153_v16 = vld [vmem:[#allocation2 + $0x38] sm:$0xff] }
 0x143   :  { %2141 = vmatprep.subr.bf16.mxu0 %v5793_v18  ;;  %2313 = vmatprep.subr.bf16.mxu1 %v5796_v19  ;;  %v161_v17 = vld [vmem:[#allocation2 + $0x78] sm:$0xff]  ;;  %v5883_v19 = vld [vmem:[#allocation7 + $0x624] ss:$16 sps:$4 sm:$0xff]  }
 0x144   :  { %v5878_v18 = vld [vmem:[#allocation7 + $0x608] ss:$16 sps:$4 sm:$0xff]  }
 0x146   :  { %2142 = vmatpush1.bf16.msra.mxu0 %v5791_v20  ;;  %2314 = vmatpush1.bf16.msra.mxu1 %v5794_v21  ;;  %v5886_v20 = vld [vmem:[#allocation7 + $0x62c] ss:$16 sps:$4 sm:$0xff]   ;;  %v5881_v21 = vld [vmem:[#allocation7 + $0x620] ss:$16 sps:$4 sm:$0xff]  }
 0x147   :  { %2143 = vmatprep.subr.bf16.mxu0 %v5799_v22  ;;  %2315 = vmatprep.subr.bf16.mxu1 %v5802_v23  ;;  %v5884_v22 = vld [vmem:[#allocation7 + $0x628] ss:$16 sps:$4 sm:$0xff]   ;;  %v169_v23 = vpack.c.bf16 %v161_v17, %v153_v16  ;;  %v5965_v16 = vld [vmem:[#allocation10 + $0x4] ss:$16 sps:$4 sm:$0xff]   ;;  %v5968_v17 = vld [vmem:[#allocation10 + $0xc] ss:$16 sps:$4 sm:$0xff]  }
 0x14a   :  { %2144 = vmatpush1.bf16.msra.mxu0 %v5797_v24  ;;  %2316 = vmatpush1.bf16.msra.mxu1 %v5800_v25  ;;  %v5889_v24 = vld [vmem:[#allocation7 + $0x644] ss:$16 sps:$4 sm:$0xff]   ;;  %v5892_v25 = vld [vmem:[#allocation7 + $0x64c] ss:$16 sps:$4 sm:$0xff]  }
 0x14b   :  { %2145 = vmatprep.subr.bf16.mxu0 %v5805_v26  ;;  %2317 = vmatprep.subr.bf16.mxu1 %v5808_v27  ;;  %v5887_v26 = vld [vmem:[#allocation7 + $0x640] ss:$16 sps:$4 sm:$0xff]   ;;  %v5890_v27 = vld [vmem:[#allocation7 + $0x648] ss:$16 sps:$4 sm:$0xff]  }
 0x14e   :  { %2146 = vmatpush1.bf16.msra.mxu0 %v5803_v28  ;;  %2318 = vmatpush1.bf16.msra.mxu1 %v5806_v29  ;;  %v5895_v28 = vld [vmem:[#allocation7 + $0x664] ss:$16 sps:$4 sm:$0xff]   ;;  %v5898_v29 = vld [vmem:[#allocation7 + $0x66c] ss:$16 sps:$4 sm:$0xff]  }
 0x14f   :  { %2147 = vmatprep.subr.bf16.mxu0 %v5811_v30  ;;  %2319 = vmatprep.subr.bf16.mxu1 %v5814_v31  ;;  %v5893_v30 = vld [vmem:[#allocation7 + $0x660] ss:$16 sps:$4 sm:$0xff]   ;;  %v5896_v31 = vld [vmem:[#allocation7 + $0x668] ss:$16 sps:$4 sm:$0xff]  }
 0x152   :  { %2148 = vmatpush1.bf16.msra.mxu0 %v5809_v32  ;;  %2320 = vmatpush1.bf16.msra.mxu1 %v5812_v33  ;;  %v5901_v32 = vld [vmem:[#allocation7 + $0x684] ss:$16 sps:$4 sm:$0xff]   ;;  %v5904_v33 = vld [vmem:[#allocation7 + $0x68c] ss:$16 sps:$4 sm:$0xff]  }
 0x153   :  { %2149 = vmatprep.subr.bf16.mxu0 %v5817_v34  ;;  %2321 = vmatprep.subr.bf16.mxu1 %v5820_v35  ;;  %v5899_v34 = vld [vmem:[#allocation7 + $0x680] ss:$16 sps:$4 sm:$0xff]   ;;  %v5902_v35 = vld [vmem:[#allocation7 + $0x688] ss:$16 sps:$4 sm:$0xff]  }
 0x156   :  { %2150 = vmatpush1.bf16.msra.mxu0 %v5815_v36  ;;  %2322 = vmatpush1.bf16.msra.mxu1 %v5818_v37  ;;  %v5907_v36 = vld [vmem:[#allocation7 + $0x6a4] ss:$16 sps:$4 sm:$0xff]   ;;  %v5910_v37 = vld [vmem:[#allocation7 + $0x6ac] ss:$16 sps:$4 sm:$0xff]  }
 0x157   :  { %2151 = vmatprep.subr.bf16.mxu0 %v5823_v38  ;;  %2323 = vmatprep.subr.bf16.mxu1 %v5826_v39  ;;  %v5905_v38 = vld [vmem:[#allocation7 + $0x6a0] ss:$16 sps:$4 sm:$0xff]   ;;  %v5908_v39 = vld [vmem:[#allocation7 + $0x6a8] ss:$16 sps:$4 sm:$0xff]  }
 0x15a   :  { %2152 = vmatpush1.bf16.msra.mxu0 %v5821_v40  ;;  %2324 = vmatpush1.bf16.msra.mxu1 %v5824_v41  ;;  %v5913_v40 = vld [vmem:[#allocation7 + $0x6c4] ss:$16 sps:$4 sm:$0xff]   ;;  %v5916_v41 = vld [vmem:[#allocation7 + $0x6cc] ss:$16 sps:$4 sm:$0xff]  }
 0x15b   :  { %2153 = vmatprep.subr.bf16.mxu0 %v5829_v42  ;;  %2325 = vmatprep.subr.bf16.mxu1 %v5832_v43  ;;  %v5911_v42 = vld [vmem:[#allocation7 + $0x6c0] ss:$16 sps:$4 sm:$0xff]   ;;  %v5914_v43 = vld [vmem:[#allocation7 + $0x6c8] ss:$16 sps:$4 sm:$0xff]  }
 0x15e   :  { %2154 = vmatpush1.bf16.msra.mxu0 %v5827_v44  ;;  %2326 = vmatpush1.bf16.msra.mxu1 %v5830_v45  ;;  %v5919_v44 = vld [vmem:[#allocation7 + $0x6e4] ss:$16 sps:$4 sm:$0xff]   ;;  %v5922_v45 = vld [vmem:[#allocation7 + $0x6ec] ss:$16 sps:$4 sm:$0xff]  }
 0x15f   :  { %2155 = vmatprep.subr.bf16.mxu0 %v5835_v46  ;;  %2327 = vmatprep.subr.bf16.mxu1 %v5838_v47  ;;  %v5917_v46 = vld [vmem:[#allocation7 + $0x6e0] ss:$16 sps:$4 sm:$0xff]   ;;  %v5920_v47 = vld [vmem:[#allocation7 + $0x6e8] ss:$16 sps:$4 sm:$0xff]  }
 0x162   :  { %2156 = vmatpush1.bf16.msra.mxu0 %v5833_v48  ;;  %2328 = vmatpush1.bf16.msra.mxu1 %v5836_v49  ;;  %v5925_v48 = vld [vmem:[#allocation7 + $0x704] ss:$16 sps:$4 sm:$0xff]   ;;  %v5928_v49 = vld [vmem:[#allocation7 + $0x70c] ss:$16 sps:$4 sm:$0xff]  }
 0x163   :  { %2157 = vmatprep.subr.bf16.mxu0 %v5841_v50  ;;  %2329 = vmatprep.subr.bf16.mxu1 %v5844_v51  ;;  %v5923_v50 = vld [vmem:[#allocation7 + $0x700] ss:$16 sps:$4 sm:$0xff]   ;;  %v5926_v51 = vld [vmem:[#allocation7 + $0x708] ss:$16 sps:$4 sm:$0xff]  }
 0x166   :  { %2158 = vmatpush1.bf16.msra.mxu0 %v5839_v52  ;;  %2330 = vmatpush1.bf16.msra.mxu1 %v5842_v53  ;;  %v5931_v52 = vld [vmem:[#allocation7 + $0x724] ss:$16 sps:$4 sm:$0xff]   ;;  %v5934_v53 = vld [vmem:[#allocation7 + $0x72c] ss:$16 sps:$4 sm:$0xff]  }
 0x167   :  { %2159 = vmatprep.subr.bf16.mxu0 %v5847_v54  ;;  %2331 = vmatprep.subr.bf16.mxu1 %v5850_v55  ;;  %v5929_v54 = vld [vmem:[#allocation7 + $0x720] ss:$16 sps:$4 sm:$0xff]   ;;  %v5932_v55 = vld [vmem:[#allocation7 + $0x728] ss:$16 sps:$4 sm:$0xff]  }
 0x16a   :  { %2160 = vmatpush1.bf16.msra.mxu0 %v5845_v56  ;;  %2332 = vmatpush1.bf16.msra.mxu1 %v5848_v57  ;;  %v5937_v56 = vld [vmem:[#allocation7 + $0x744] ss:$16 sps:$4 sm:$0xff]   ;;  %v5940_v57 = vld [vmem:[#allocation7 + $0x74c] ss:$16 sps:$4 sm:$0xff]  }
 0x16b   :  { %2161 = vmatprep.subr.bf16.mxu0 %v5853_v58  ;;  %2333 = vmatprep.subr.bf16.mxu1 %v5856_v59  ;;  %v5935_v58 = vld [vmem:[#allocation7 + $0x740] ss:$16 sps:$4 sm:$0xff]   ;;  %v5938_v59 = vld [vmem:[#allocation7 + $0x748] ss:$16 sps:$4 sm:$0xff]  }
 0x16e   :  { %2162 = vmatpush1.bf16.msra.mxu0 %v5851_v60  ;;  %2334 = vmatpush1.bf16.msra.mxu1 %v5854_v61  ;;  %v5943_v60 = vld [vmem:[#allocation7 + $0x764] ss:$16 sps:$4 sm:$0xff]   ;;  %v5946_v61 = vld [vmem:[#allocation7 + $0x76c] ss:$16 sps:$4 sm:$0xff]  }
 0x16f   :  { %2163 = vmatprep.subr.bf16.mxu0 %v5859_v62  ;;  %2335 = vmatprep.subr.bf16.mxu1 %v5862_v63  ;;  %v5941_v62 = vld [vmem:[#allocation7 + $0x760] ss:$16 sps:$4 sm:$0xff]   ;;  %v5944_v63 = vld [vmem:[#allocation7 + $0x768] ss:$16 sps:$4 sm:$0xff]  }
 0x172   :  { %2164 = vmatpush1.bf16.msra.mxu0 %v5857_v0  ;;  %2336 = vmatpush1.bf16.msra.mxu1 %v5860_v1  ;;  %v5949_v0 = vld [vmem:[#allocation7 + $0x784] ss:$16 sps:$4 sm:$0xff]   ;;  %v5952_v1 = vld [vmem:[#allocation7 + $0x78c] ss:$16 sps:$4 sm:$0xff]  }
 0x173   :  { %2165 = vmatprep.subr.bf16.mxu0 %v5865_v2  ;;  %2337 = vmatprep.subr.bf16.mxu1 %v5868_v3  ;;  %v5947_v2 = vld [vmem:[#allocation7 + $0x780] ss:$16 sps:$4 sm:$0xff]   ;;  %v5950_v3 = vld [vmem:[#allocation7 + $0x788] ss:$16 sps:$4 sm:$0xff]  }
 0x176   :  { %2166 = vmatpush1.bf16.msra.mxu0 %v5863_v4  ;;  %2338 = vmatpush1.bf16.msra.mxu1 %v5866_v5  ;;  %v5955_v4 = vld [vmem:[#allocation7 + $0x7a4] ss:$16 sps:$4 sm:$0xff]   ;;  %v5958_v5 = vld [vmem:[#allocation7 + $0x7ac] ss:$16 sps:$4 sm:$0xff]  }
 0x177   :  { %2167 = vmatprep.subr.bf16.mxu0 %v5871_v6  ;;  %2339 = vmatprep.subr.bf16.mxu1 %v5874_v7  ;;  %v418_v6 = vld [vmem:[#allocation7 + $0x7c0] sm:$0xff]  ;;  %v419_v7 = vld [vmem:[#allocation7 + $0x7c8] sm:$0xff] }
 0x178   :  { %v5095_v11 = vcombine.high %v419_v7, %v419_v7  ;;  %v5092_v12 = vcombine.low %v418_v6, %v418_v6 }
 0x17a   :  { %2168 = vmatpush1.bf16.msra.mxu0 %v5869_v8  ;;  %2340 = vmatpush1.bf16.msra.mxu1 %v5872_v9  ;;  %v5953_v8 = vld [vmem:[#allocation7 + $0x7a0] ss:$16 sps:$4 sm:$0xff]   ;;  %v5956_v9 = vld [vmem:[#allocation7 + $0x7a8] ss:$16 sps:$4 sm:$0xff]  }
 0x17b   :  { %2180 = vmatprep.subr.bf16.mxu0 %v5877_v10  ;;  %2352 = vmatprep.subr.bf16.mxu1 %v5880_v13  ;;  %v5093_v10 = vcombine.high %v418_v6, %v418_v6  ;;  %v5094_v13 = vcombine.low %v419_v7, %v419_v7  ;;  %v6038_v6 = vld [vmem:[#allocation10 + $0x188] ss:$16 sps:$4 sm:$0xff]   ;;  %v6043_v7 = vld [vmem:[#allocation10 + $0x1a4] ss:$16 sps:$4 sm:$0xff]  }
 0x17d   :  { %2170 = vmatmul.mubr.bf16.vlgmr.msra.gmra.mrb[0].mxu0 %v166_v15  ;;  %2342 = vmatmul.mubr.bf16.vlgmr.msra.gmra.mrb[0].mxu1 %v166_v15  ;;  %v160_v15 = vld [vmem:[#allocation2 + $0x70] sm:$0xff] }
 0x17e   :  { %2181 = vmatpush1.bf16.msra.mxu0 %v5875_v14  ;;  %2353 = vmatpush1.bf16.msra.mxu1 %v5878_v18  ;;  %v152_v14 = vld [vmem:[#allocation2 + $0x30] sm:$0xff]  ;;  %v2040_v18 = vsel %vm2038_vm4, %v5092_v12, 0  ;;  %v6052_v12 = vld [vmem:[#allocation10 + $0x1cc] ss:$16 sps:$4 sm:$0xff]  }
 0x17f   :  { %2182 = vmatprep.subr.bf16.mxu0 %v5883_v19  ;;  %2354 = vmatprep.subr.bf16.mxu1 %v5886_v20  ;;  %v2046_v19 = vsel %vm2038_vm4, %v5094_v13, 0  ;;  %v5963_v20 = vld [vmem:[#allocation10] ss:$16 sps:$4 sm:$0xff]  }
 0x180   :  { %5097 = vmatprep.mubr.msk.bf16.mxu0 %vm2034_vm3, %v169_v23  ;;  %5099 = vmatprep.mubr.msk.bf16.mxu1 %vm2034_vm3, %v169_v23  ;;  %v5971_v23 = vld [vmem:[#allocation10 + $0x24] ss:$16 sps:$4 sm:$0xff]   ;;  %v6047_v13 = vld [vmem:[#allocation10 + $0x1c0] ss:$16 sps:$4 sm:$0xff]  }
 0x182   :  { %2183 = vmatpush1.bf16.msra.mxu0 %v5881_v21  ;;  %2355 = vmatpush1.bf16.msra.mxu1 %v5884_v22  ;;  %v5966_v21 = vld [vmem:[#allocation10 + $0x8] ss:$16 sps:$4 sm:$0xff]   ;;  %v168_v22 = vpack.c.bf16 %v160_v15, %v152_v14  ;;  %v6055_v15 = vld [vmem:[#allocation10 + $0x1e4] ss:$16 sps:$4 sm:$0xff]  }
 0x183   :  { %2184 = vmatprep.subr.bf16.mxu0 %v5889_v24  ;;  %2356 = vmatprep.subr.bf16.mxu1 %v5892_v25  ;;  %v5974_v24 = vld [vmem:[#allocation10 + $0x2c] ss:$16 sps:$4 sm:$0xff]   ;;  %v5969_v25 = vld [vmem:[#allocation10 + $0x20] ss:$16 sps:$4 sm:$0xff]   ;;  %v6050_v14 = vld [vmem:[#allocation10 + $0x1c8] ss:$16 sps:$4 sm:$0xff]  }
 0x186   :  { %2185 = vmatpush1.bf16.msra.mxu0 %v5887_v26  ;;  %2357 = vmatpush1.bf16.msra.mxu1 %v5890_v27  ;;  %v5972_v26 = vld [vmem:[#allocation10 + $0x28] ss:$16 sps:$4 sm:$0xff]   ;;  %v5977_v27 = vld [vmem:[#allocation10 + $0x44] ss:$16 sps:$4 sm:$0xff]  }
 0x187   :  { %2186 = vmatprep.subr.bf16.mxu0 %v5895_v28  ;;  %2358 = vmatprep.subr.bf16.mxu1 %v5898_v29  ;;  %v5980_v28 = vld [vmem:[#allocation10 + $0x4c] ss:$16 sps:$4 sm:$0xff]   ;;  %v5975_v29 = vld [vmem:[#allocation10 + $0x40] ss:$16 sps:$4 sm:$0xff]  }
 0x18a   :  { %2187 = vmatpush1.bf16.msra.mxu0 %v5893_v30  ;;  %2359 = vmatpush1.bf16.msra.mxu1 %v5896_v31  ;;  %v5978_v30 = vld [vmem:[#allocation10 + $0x48] ss:$16 sps:$4 sm:$0xff]   ;;  %v5983_v31 = vld [vmem:[#allocation10 + $0x64] ss:$16 sps:$4 sm:$0xff]  }
 0x18b   :  { %2188 = vmatprep.subr.bf16.mxu0 %v5901_v32  ;;  %2360 = vmatprep.subr.bf16.mxu1 %v5904_v33  ;;  %v5986_v32 = vld [vmem:[#allocation10 + $0x6c] ss:$16 sps:$4 sm:$0xff]   ;;  %v5981_v33 = vld [vmem:[#allocation10 + $0x60] ss:$16 sps:$4 sm:$0xff]  }
 0x18e   :  { %2189 = vmatpush1.bf16.msra.mxu0 %v5899_v34  ;;  %2361 = vmatpush1.bf16.msra.mxu1 %v5902_v35  ;;  %v5984_v34 = vld [vmem:[#allocation10 + $0x68] ss:$16 sps:$4 sm:$0xff]   ;;  %v5989_v35 = vld [vmem:[#allocation10 + $0x84] ss:$16 sps:$4 sm:$0xff]  }
 0x18f   :  { %2190 = vmatprep.subr.bf16.mxu0 %v5907_v36  ;;  %2362 = vmatprep.subr.bf16.mxu1 %v5910_v37  ;;  %v5992_v36 = vld [vmem:[#allocation10 + $0x8c] ss:$16 sps:$4 sm:$0xff]   ;;  %v5987_v37 = vld [vmem:[#allocation10 + $0x80] ss:$16 sps:$4 sm:$0xff]  }
 0x192   :  { %2191 = vmatpush1.bf16.msra.mxu0 %v5905_v38  ;;  %2363 = vmatpush1.bf16.msra.mxu1 %v5908_v39  ;;  %v5990_v38 = vld [vmem:[#allocation10 + $0x88] ss:$16 sps:$4 sm:$0xff]   ;;  %v5995_v39 = vld [vmem:[#allocation10 + $0xa4] ss:$16 sps:$4 sm:$0xff]  }
 0x193   :  { %2192 = vmatprep.subr.bf16.mxu0 %v5913_v40  ;;  %2364 = vmatprep.subr.bf16.mxu1 %v5916_v41  ;;  %v5998_v40 = vld [vmem:[#allocation10 + $0xac] ss:$16 sps:$4 sm:$0xff]   ;;  %v5993_v41 = vld [vmem:[#allocation10 + $0xa0] ss:$16 sps:$4 sm:$0xff]  }
 0x196   :  { %2193 = vmatpush1.bf16.msra.mxu0 %v5911_v42  ;;  %2365 = vmatpush1.bf16.msra.mxu1 %v5914_v43  ;;  %v5996_v42 = vld [vmem:[#allocation10 + $0xa8] ss:$16 sps:$4 sm:$0xff]   ;;  %v6001_v43 = vld [vmem:[#allocation10 + $0xc4] ss:$16 sps:$4 sm:$0xff]  }
 0x197   :  { %2194 = vmatprep.subr.bf16.mxu0 %v5919_v44  ;;  %2366 = vmatprep.subr.bf16.mxu1 %v5922_v45  ;;  %v6004_v44 = vld [vmem:[#allocation10 + $0xcc] ss:$16 sps:$4 sm:$0xff]   ;;  %v5999_v45 = vld [vmem:[#allocation10 + $0xc0] ss:$16 sps:$4 sm:$0xff]  }
 0x19a   :  { %2195 = vmatpush1.bf16.msra.mxu0 %v5917_v46  ;;  %2367 = vmatpush1.bf16.msra.mxu1 %v5920_v47  ;;  %v6002_v46 = vld [vmem:[#allocation10 + $0xc8] ss:$16 sps:$4 sm:$0xff]   ;;  %v6007_v47 = vld [vmem:[#allocation10 + $0xe4] ss:$16 sps:$4 sm:$0xff]  }
 0x19b   :  { %2196 = vmatprep.subr.bf16.mxu0 %v5925_v48  ;;  %2368 = vmatprep.subr.bf16.mxu1 %v5928_v49  ;;  %v6010_v48 = vld [vmem:[#allocation10 + $0xec] ss:$16 sps:$4 sm:$0xff]   ;;  %v6005_v49 = vld [vmem:[#allocation10 + $0xe0] ss:$16 sps:$4 sm:$0xff]  }
 0x19e   :  { %2197 = vmatpush1.bf16.msra.mxu0 %v5923_v50  ;;  %2369 = vmatpush1.bf16.msra.mxu1 %v5926_v51  ;;  %v6008_v50 = vld [vmem:[#allocation10 + $0xe8] ss:$16 sps:$4 sm:$0xff]   ;;  %v6013_v51 = vld [vmem:[#allocation10 + $0x104] ss:$16 sps:$4 sm:$0xff]  }
 0x19f   :  { %2198 = vmatprep.subr.bf16.mxu0 %v5931_v52  ;;  %2370 = vmatprep.subr.bf16.mxu1 %v5934_v53  ;;  %v6016_v52 = vld [vmem:[#allocation10 + $0x10c] ss:$16 sps:$4 sm:$0xff]   ;;  %v6011_v53 = vld [vmem:[#allocation10 + $0x100] ss:$16 sps:$4 sm:$0xff]  }
 0x1a2   :  { %2199 = vmatpush1.bf16.msra.mxu0 %v5929_v54  ;;  %2371 = vmatpush1.bf16.msra.mxu1 %v5932_v55  ;;  %v6014_v54 = vld [vmem:[#allocation10 + $0x108] ss:$16 sps:$4 sm:$0xff]   ;;  %v6019_v55 = vld [vmem:[#allocation10 + $0x124] ss:$16 sps:$4 sm:$0xff]  }
 0x1a3   :  { %2200 = vmatprep.subr.bf16.mxu0 %v5937_v56  ;;  %2372 = vmatprep.subr.bf16.mxu1 %v5940_v57  ;;  %v6022_v56 = vld [vmem:[#allocation10 + $0x12c] ss:$16 sps:$4 sm:$0xff]   ;;  %v6017_v57 = vld [vmem:[#allocation10 + $0x120] ss:$16 sps:$4 sm:$0xff]  }
 0x1a6   :  { %2201 = vmatpush1.bf16.msra.mxu0 %v5935_v58  ;;  %2373 = vmatpush1.bf16.msra.mxu1 %v5938_v59  ;;  %v6020_v58 = vld [vmem:[#allocation10 + $0x128] ss:$16 sps:$4 sm:$0xff]   ;;  %v6025_v59 = vld [vmem:[#allocation10 + $0x144] ss:$16 sps:$4 sm:$0xff]  }
 0x1a7   :  { %2202 = vmatprep.subr.bf16.mxu0 %v5943_v60  ;;  %2374 = vmatprep.subr.bf16.mxu1 %v5946_v61  ;;  %v6028_v60 = vld [vmem:[#allocation10 + $0x14c] ss:$16 sps:$4 sm:$0xff]   ;;  %v6023_v61 = vld [vmem:[#allocation10 + $0x140] ss:$16 sps:$4 sm:$0xff]  }
 0x1aa   :  { %2203 = vmatpush1.bf16.msra.mxu0 %v5941_v62  ;;  %2375 = vmatpush1.bf16.msra.mxu1 %v5944_v63  ;;  %v6026_v62 = vld [vmem:[#allocation10 + $0x148] ss:$16 sps:$4 sm:$0xff]   ;;  %v6031_v63 = vld [vmem:[#allocation10 + $0x164] ss:$16 sps:$4 sm:$0xff]  }
 0x1ab   :  { %2204 = vmatprep.subr.bf16.mxu0 %v5949_v0  ;;  %2376 = vmatprep.subr.bf16.mxu1 %v5952_v1  ;;  %v6034_v0 = vld [vmem:[#allocation10 + $0x16c] ss:$16 sps:$4 sm:$0xff]   ;;  %v6029_v1 = vld [vmem:[#allocation10 + $0x160] ss:$16 sps:$4 sm:$0xff]  }
 0x1ae   :  { %2205 = vmatpush1.bf16.msra.mxu0 %v5947_v2  ;;  %2377 = vmatpush1.bf16.msra.mxu1 %v5950_v3  ;;  %v6032_v2 = vld [vmem:[#allocation10 + $0x168] ss:$16 sps:$4 sm:$0xff]   ;;  %v6037_v3 = vld [vmem:[#allocation10 + $0x184] ss:$16 sps:$4 sm:$0xff]  }
 0x1af   :  { %2206 = vmatprep.subr.bf16.mxu0 %v5955_v4  ;;  %2378 = vmatprep.subr.bf16.mxu1 %v5958_v5  ;;  %v6040_v4 = vld [vmem:[#allocation10 + $0x18c] ss:$16 sps:$4 sm:$0xff]   ;;  %v6035_v5 = vld [vmem:[#allocation10 + $0x180] ss:$16 sps:$4 sm:$0xff]  }
 0x1b2   :  { %2207 = vmatpush1.bf16.msra.mxu0 %v5953_v8  ;;  %2379 = vmatpush1.bf16.msra.mxu1 %v5956_v9  ;;  %v6046_v8 = vld [vmem:[#allocation10 + $0x1ac] ss:$16 sps:$4 sm:$0xff]   ;;  %v6041_v9 = vld [vmem:[#allocation10 + $0x1a0] ss:$16 sps:$4 sm:$0xff]  }
 0x1b3   :  { %5096 = vmatprep.subr.msk.bf16.mxu0 %vm2038_vm4, %v5093_v10  ;;  %5098 = vmatprep.subr.msk.bf16.mxu1 %vm2038_vm4, %v5095_v11  ;;  %v6044_v10 = vld [vmem:[#allocation10 + $0x1a8] ss:$16 sps:$4 sm:$0xff]   ;;  %v6049_v11 = vld [vmem:[#allocation10 + $0x1c4] ss:$16 sps:$4 sm:$0xff]  }
 0x1b6   :  { %2209 = vmatpush1.bf16.msra.mxu0 %v2040_v18  ;;  %2381 = vmatpush1.bf16.msra.mxu1 %v2046_v19  ;;  %v6056_v18 = vld [vmem:[#allocation10 + $0x1e8] ss:$16 sps:$4 sm:$0xff]   ;;  %v6061_v19 = vld [vmem:[#allocation10 + $0x204] ss:$16 sps:$4 sm:$0xff]  }
 0x1b7   :  { %3225 = vmatprep.subr.bf16.mxu0 %v5965_v16  ;;  %3311 = vmatprep.subr.bf16.mxu1 %v5968_v17  ;;  %v6058_v16 = vld [vmem:[#allocation10 + $0x1ec] ss:$16 sps:$4 sm:$0xff]   ;;  %v6053_v17 = vld [vmem:[#allocation10 + $0x1e0] ss:$16 sps:$4 sm:$0xff]  }
 0x1b9   :  { %2213 = vmatmul.mubr.bf16.vlgmr.msra.gmra.mrb[0].mxu0 %v168_v22  ;;  %2385 = vmatmul.mubr.bf16.vlgmr.msra.gmra.mrb[0].mxu1 %v168_v22 }
 0x1ba   :  { %3226 = vmatpush1.bf16.msra.mxu0 %v5963_v20  ;;  %3312 = vmatpush1.bf16.msra.mxu1 %v5966_v21  ;;  %v6064_v20 = vld [vmem:[#allocation10 + $0x20c] ss:$16 sps:$4 sm:$0xff]   ;;  %v2396_v21 = vlaneseq }
 0x1bb   :  { %3227 = vmatprep.subr.bf16.mxu0 %v5971_v23  ;;  %3313 = vmatprep.subr.bf16.mxu1 %v5974_v24  ;;  %v138_v24 = vld [vmem:[#allocation14] ss:$8 sm:$0xf] }
 0x1bc   :  { %v2397_v22 = vshrl.u32 %v2396_v21, 7  ;;  %v6101_v21 = vld [vmem:[#allocation10 + $0x2e0] ss:$16 sps:$4 sm:$0xff]  }
 0x1be   :  { %3228 = vmatpush1.bf16.msra.mxu0 %v5969_v25  ;;  %3314 = vmatpush1.bf16.msra.mxu1 %v5972_v26  ;;  %v6773_v23 = vsub.s32 2, %v2397_v22  ;;  %v6775_v25 = vsub.s32 1, %v2397_v22  ;;  %v6777_v26 = vsub.s32 0, %v2397_v22 }
 0x1bf   :  { %3229 = vmatprep.subr.bf16.mxu0 %v5977_v27  ;;  %3315 = vmatprep.subr.bf16.mxu1 %v5980_v28  ;;  %v6780_v28 = vsub.s32 3, %v2397_v22  ;;  %v6104_v22 = vld [vmem:[#allocation10 + $0x2e8] ss:$16 sps:$4 sm:$0xff]  }
 0x1c0   :  { %v2407_v27 = vrot.slane %v138_v24, %v6773_v23 }
 0x1c2   :  { %3230 = vmatpush1.bf16.msra.mxu0 %v5975_v29  ;;  %3316 = vmatpush1.bf16.msra.mxu1 %v5978_v30  ;;  %v2403_v29 = vrot.slane %v138_v24, %v6775_v25  ;;  %v2399_v30 = vrot.slane %v138_v24, %v6777_v26 }
 0x1c3   :  { %3231 = vmatprep.subr.bf16.mxu0 %v5983_v31  ;;  %3317 = vmatprep.subr.bf16.mxu1 %v5986_v32 }
 0x1c6   :  { %3232 = vmatpush1.bf16.msra.mxu0 %v5981_v33  ;;  %3318 = vmatpush1.bf16.msra.mxu1 %v5984_v34 }
 0x1c7   :  { %3233 = vmatprep.subr.bf16.mxu0 %v5989_v35  ;;  %3319 = vmatprep.subr.bf16.mxu1 %v5992_v36  ;;  %v2411_v36 = vrot.slane %v138_v24, %v6780_v28  ;;  %v6109_v24 = vld [vmem:[#allocation10 + $0x304] ss:$16 sps:$4 sm:$0xff]  }
 0x1ca   :  { %3234 = vmatpush1.bf16.msra.mxu0 %v5987_v37  ;;  %3320 = vmatpush1.bf16.msra.mxu1 %v5990_v38 }
 0x1cb   :  { %3235 = vmatprep.subr.bf16.mxu0 %v5995_v39  ;;  %3321 = vmatprep.subr.bf16.mxu1 %v5998_v40 }
 0x1ce   :  { %3236 = vmatpush1.bf16.msra.mxu0 %v5993_v41  ;;  %3322 = vmatpush1.bf16.msra.mxu1 %v5996_v42 }
 0x1cf   :  { %3237 = vmatprep.subr.bf16.mxu0 %v6001_v43  ;;  %3323 = vmatprep.subr.bf16.mxu1 %v6004_v44 }
 0x1d2   :  { %3238 = vmatpush1.bf16.msra.mxu0 %v5999_v45  ;;  %3324 = vmatpush1.bf16.msra.mxu1 %v6002_v46 }
 0x1d3   :  { %3239 = vmatprep.subr.bf16.mxu0 %v6007_v47  ;;  %3325 = vmatprep.subr.bf16.mxu1 %v6010_v48 }
 0x1d6   :  { %3240 = vmatpush1.bf16.msra.mxu0 %v6005_v49  ;;  %3326 = vmatpush1.bf16.msra.mxu1 %v6008_v50 }
 0x1d7   :  { %3241 = vmatprep.subr.bf16.mxu0 %v6013_v51  ;;  %3327 = vmatprep.subr.bf16.mxu1 %v6016_v52 }
 0x1da   :  { %3242 = vmatpush1.bf16.msra.mxu0 %v6011_v53  ;;  %3328 = vmatpush1.bf16.msra.mxu1 %v6014_v54  ;;  %v6059_v54 = vld [vmem:[#allocation10 + $0x200] ss:$16 sps:$4 sm:$0xff]  }
 0x1db   :  { %3243 = vmatprep.subr.bf16.mxu0 %v6019_v55  ;;  %3329 = vmatprep.subr.bf16.mxu1 %v6022_v56  ;;  %v6062_v55 = vld [vmem:[#allocation10 + $0x208] ss:$16 sps:$4 sm:$0xff]  }
 0x1de   :  { %3244 = vmatpush1.bf16.msra.mxu0 %v6017_v57  ;;  %3330 = vmatpush1.bf16.msra.mxu1 %v6020_v58  ;;  %v6067_v58 = vld [vmem:[#allocation10 + $0x224] ss:$16 sps:$4 sm:$0xff]  }
 0x1df   :  { %3245 = vmatprep.subr.bf16.mxu0 %v6025_v59  ;;  %3331 = vmatprep.subr.bf16.mxu1 %v6028_v60  ;;  %v6070_v59 = vld [vmem:[#allocation10 + $0x22c] ss:$16 sps:$4 sm:$0xff]  }
 0x1e2   :  { %3246 = vmatpush1.bf16.msra.mxu0 %v6023_v61  ;;  %3332 = vmatpush1.bf16.msra.mxu1 %v6026_v62  ;;  %v6065_v61 = vld [vmem:[#allocation10 + $0x220] ss:$16 sps:$4 sm:$0xff]   ;;  %v6068_v62 = vld [vmem:[#allocation10 + $0x228] ss:$16 sps:$4 sm:$0xff]  }
 0x1e3   :  { %3247 = vmatprep.subr.bf16.mxu0 %v6031_v63  ;;  %3333 = vmatprep.subr.bf16.mxu1 %v6034_v0  ;;  %v6073_v63 = vld [vmem:[#allocation10 + $0x244] ss:$16 sps:$4 sm:$0xff]   ;;  %v6076_v0 = vld [vmem:[#allocation10 + $0x24c] ss:$16 sps:$4 sm:$0xff]  }
 0x1e6   :  { %3248 = vmatpush1.bf16.msra.mxu0 %v6029_v1  ;;  %3334 = vmatpush1.bf16.msra.mxu1 %v6032_v2  ;;  %v6071_v1 = vld [vmem:[#allocation10 + $0x240] ss:$16 sps:$4 sm:$0xff]   ;;  %v6074_v2 = vld [vmem:[#allocation10 + $0x248] ss:$16 sps:$4 sm:$0xff]  }
 0x1e7   :  { %3249 = vmatprep.subr.bf16.mxu0 %v6037_v3  ;;  %3335 = vmatprep.subr.bf16.mxu1 %v6040_v4  ;;  %v6079_v3 = vld [vmem:[#allocation10 + $0x264] ss:$16 sps:$4 sm:$0xff]   ;;  %v6082_v4 = vld [vmem:[#allocation10 + $0x26c] ss:$16 sps:$4 sm:$0xff]  }
 0x1ea   :  { %3250 = vmatpush1.bf16.msra.mxu0 %v6035_v5  ;;  %3336 = vmatpush1.bf16.msra.mxu1 %v6038_v6  ;;  %v6077_v5 = vld [vmem:[#allocation10 + $0x260] ss:$16 sps:$4 sm:$0xff]   ;;  %v6080_v6 = vld [vmem:[#allocation10 + $0x268] ss:$16 sps:$4 sm:$0xff]  }
 0x1eb   :  { %3251 = vmatprep.subr.bf16.mxu0 %v6043_v7  ;;  %3337 = vmatprep.subr.bf16.mxu1 %v6046_v8  ;;  %v6085_v7 = vld [vmem:[#allocation10 + $0x284] ss:$16 sps:$4 sm:$0xff]   ;;  %v6088_v8 = vld [vmem:[#allocation10 + $0x28c] ss:$16 sps:$4 sm:$0xff]  }
 0x1ee   :  { %3252 = vmatpush1.bf16.msra.mxu0 %v6041_v9  ;;  %3338 = vmatpush1.bf16.msra.mxu1 %v6044_v10  ;;  %v6083_v9 = vld [vmem:[#allocation10 + $0x280] ss:$16 sps:$4 sm:$0xff]   ;;  %v6086_v10 = vld [vmem:[#allocation10 + $0x288] ss:$16 sps:$4 sm:$0xff]  }
 0x1ef   :  { %3253 = vmatprep.subr.bf16.mxu0 %v6049_v11  ;;  %3339 = vmatprep.subr.bf16.mxu1 %v6052_v12  ;;  %v6091_v11 = vld [vmem:[#allocation10 + $0x2a4] ss:$16 sps:$4 sm:$0xff]   ;;  %v6094_v12 = vld [vmem:[#allocation10 + $0x2ac] ss:$16 sps:$4 sm:$0xff]  }
 0x1f2   :  { %3254 = vmatpush1.bf16.msra.mxu0 %v6047_v13  ;;  %3340 = vmatpush1.bf16.msra.mxu1 %v6050_v14  ;;  %v6089_v13 = vld [vmem:[#allocation10 + $0x2a0] ss:$16 sps:$4 sm:$0xff]   ;;  %v6092_v14 = vld [vmem:[#allocation10 + $0x2a8] ss:$16 sps:$4 sm:$0xff]  }
 0x1f3   :  { %3255 = vmatprep.subr.bf16.mxu0 %v6055_v15  ;;  %3341 = vmatprep.subr.bf16.mxu1 %v6058_v16  ;;  %v6097_v15 = vld [vmem:[#allocation10 + $0x2c4] ss:$16 sps:$4 sm:$0xff]   ;;  %v6100_v16 = vld [vmem:[#allocation10 + $0x2cc] ss:$16 sps:$4 sm:$0xff]  }
 0x1f6   :  { %3256 = vmatpush1.bf16.msra.mxu0 %v6053_v17  ;;  %3342 = vmatpush1.bf16.msra.mxu1 %v6056_v18  ;;  %v6095_v17 = vld [vmem:[#allocation10 + $0x2c0] ss:$16 sps:$4 sm:$0xff]   ;;  %v6098_v18 = vld [vmem:[#allocation10 + $0x2c8] ss:$16 sps:$4 sm:$0xff]  }
 0x1f7   :  { %3268 = vmatprep.subr.bf16.mxu0 %v6061_v19  ;;  %3354 = vmatprep.subr.bf16.mxu1 %v6064_v20  ;;  %v6103_v19 = vld [vmem:[#allocation10 + $0x2e4] ss:$16 sps:$4 sm:$0xff]   ;;  %v6106_v20 = vld [vmem:[#allocation10 + $0x2ec] ss:$16 sps:$4 sm:$0xff]  }
 0x28c   :  { %v2214_v31 = vpop.f32.mrb[0].mxu0  ;;  %v2386_v32 = vpop.f32.mrb[0].mxu1 }
 0x28d   :  { %v6784_v33 = vadd.f32 %v2407_v27, %v2386_v32  ;;  %v2216_v34 = vpop.f32.mrb[1].mxu0  ;;  %v2388_v35 = vpop.f32.mrb[1].mxu1  ;;  %v6789_v40 = vadd.f32 %v2399_v30, %v2214_v31  ;;  %v6115_v31 = vld [vmem:[#allocation10 + $0x324] ss:$16 sps:$4 sm:$0xff]   ;;  %v6118_v32 = vld [vmem:[#allocation10 + $0x32c] ss:$16 sps:$4 sm:$0xff]  }
 0x28e   :  { %v6787_v37 = vadd.f32 %v2403_v29, %v2216_v34  ;;  %v2218_v38 = vpop.f32.mrb[2].mxu0  ;;  %v2390_v39 = vpop.f32.mrb[2].mxu1  ;;  %v6799_v47 = vadd.f32 %v2411_v36, %v2388_v35  ;;  %v6113_v34 = vld [vmem:[#allocation10 + $0x320] ss:$16 sps:$4 sm:$0xff]   ;;  %v6116_v35 = vld [vmem:[#allocation10 + $0x328] ss:$16 sps:$4 sm:$0xff]  }
 0x28f   :  { %v6791_v41 = vadd.f32 %v2399_v30, %v2218_v38  ;;  %v6793_v42 = vadd.f32 %v2407_v27, %v2390_v39  ;;  %v2220_v43 = vpop.f32.mrb[3].mxu0  ;;  %v2392_v44 = vpop.f32.mrb[3].mxu1  ;;  %v2424_v51 = vmax.f32 %v6789_v40, 0.0  ;;  %v6112_v27 = vld [vmem:[#allocation10 + $0x30c] ss:$16 sps:$4 sm:$0xff]  }
 0x290   :  { %v6795_v45 = vadd.f32 %v2403_v29, %v2220_v43  ;;  %v6797_v46 = vadd.f32 %v2411_v36, %v2392_v44  ;;  %v2425_v49 = vmax.f32 %v6787_v37, 0.0  ;;  %v2427_v56 = vmax.f32 %v6799_v47, 0.0  ;;  %v6107_v29 = vld [vmem:[#allocation10 + $0x300] ss:$16 sps:$4 sm:$0xff]   ;;  %v6110_v30 = vld [vmem:[#allocation10 + $0x308] ss:$16 sps:$4 sm:$0xff]  }
 0x291   :  { %v2428_v48 = vmax.f32 %v6791_v41, 0.0  ;;  %v6121_v36 = vld [vmem:[#allocation10 + $0x344] ss:$16 sps:$4 sm:$0xff]   ;;  %v6124_v38 = vld [vmem:[#allocation10 + $0x34c] ss:$16 sps:$4 sm:$0xff]  }
 0x292   :  { %v2429_v50 = vmax.f32 %v6795_v45, 0.0  ;;  %v2431_v52 = vmax.f32 %v6797_v46, 0.0  ;;  %v6119_v39 = vld [vmem:[#allocation10 + $0x340] ss:$16 sps:$4 sm:$0xff]   ;;  %v6122_v43 = vld [vmem:[#allocation10 + $0x348] ss:$16 sps:$4 sm:$0xff]  }
 0x293   :  { %v2432_v57 = vpack.c.bf16 %v2428_v48, %v2424_v51  ;;  %v6127_v44 = vld [vmem:[#allocation10 + $0x364] ss:$16 sps:$4 sm:$0xff]   ;;  %v6605_v46 = vmov 0  }
 0x294   :  { %v2433_v53 = vpack.c.bf16 %v2429_v50, %v2425_v49  ;;  %v2435_v60 = vpack.c.bf16 %v2431_v52, %v2427_v56  ;;  %v144_v45 = vld [vmem:[#allocation14 + $0x4] ss:$0 sm:$0xff]  ;;  %5522 = vset.pattern.permute.xlu0 %v6605_v46 }
 0x295   :  { %4734 = vperm.xlu0 %5522, %v144_v45  }
 0x296   :  { %3257 = vmatprep.mubr.bf16.mxu0 %v2433_v53  ;;  %3343 = vmatprep.mubr.bf16.mxu1 %v2433_v53  ;;  %v6130_v53 = vld [vmem:[#allocation10 + $0x36c] ss:$16 sps:$4 sm:$0xff]  }
 0x297   :  { %3258 = vmatmul.mubr.bf16.vlgmr.msra.gmra.mrb[4].mxu0 %v2432_v57  ;;  %3344 = vmatmul.mubr.bf16.vlgmr.msra.gmra.mrb[4].mxu1 %v2432_v57  ;;  %v6133_v57 = vld [vmem:[#allocation10 + $0x384] ss:$16 sps:$4 sm:$0xff]  }
 0x298   :  { %3269 = vmatpush1.bf16.msra.mxu0 %v6059_v54  ;;  %3355 = vmatpush1.bf16.msra.mxu1 %v6062_v55  ;;  %v6125_v54 = vld [vmem:[#allocation10 + $0x360] ss:$16 sps:$4 sm:$0xff]   ;;  %v6128_v55 = vld [vmem:[#allocation10 + $0x368] ss:$16 sps:$4 sm:$0xff]  }
 0x299   :  { %3300 = vmatprep.mubr.bf16.mxu0 %v2435_v60  ;;  %3386 = vmatprep.mubr.bf16.mxu1 %v2435_v60  ;;  %v6134_v60 = vld [vmem:[#allocation10 + $0x388] ss:$16 sps:$4 sm:$0xff]  }
 0x29a   :  { %3270 = vmatprep.subr.bf16.mxu0 %v6067_v58  ;;  %3356 = vmatprep.subr.bf16.mxu1 %v6070_v59  ;;  %v6136_v58 = vld [vmem:[#allocation10 + $0x38c] ss:$16 sps:$4 sm:$0xff]   ;;  %v6131_v59 = vld [vmem:[#allocation10 + $0x380] ss:$16 sps:$4 sm:$0xff]  }
 0x29c   :  { %3271 = vmatpush1.bf16.msra.mxu0 %v6065_v61  ;;  %3357 = vmatpush1.bf16.msra.mxu1 %v6068_v62  ;;  %v6139_v61 = vld [vmem:[#allocation10 + $0x3a4] ss:$16 sps:$4 sm:$0xff]   ;;  %v6142_v62 = vld [vmem:[#allocation10 + $0x3ac] ss:$16 sps:$4 sm:$0xff]  }
 0x29d   :  { %3272 = vmatprep.subr.bf16.mxu0 %v6073_v63  ;;  %3358 = vmatprep.subr.bf16.mxu1 %v6076_v0  ;;  %v6137_v63 = vld [vmem:[#allocation10 + $0x3a0] ss:$16 sps:$4 sm:$0xff]   ;;  %v6140_v0 = vld [vmem:[#allocation10 + $0x3a8] ss:$16 sps:$4 sm:$0xff]  }
 0x2a0   :  { %3273 = vmatpush1.bf16.msra.mxu0 %v6071_v1  ;;  %3359 = vmatpush1.bf16.msra.mxu1 %v6074_v2  ;;  %v6145_v1 = vld [vmem:[#allocation10 + $0x3c4] ss:$16 sps:$4 sm:$0xff]   ;;  %v6148_v2 = vld [vmem:[#allocation10 + $0x3cc] ss:$16 sps:$4 sm:$0xff]  }
 0x2a1   :  { %3274 = vmatprep.subr.bf16.mxu0 %v6079_v3  ;;  %3360 = vmatprep.subr.bf16.mxu1 %v6082_v4  ;;  %v6143_v3 = vld [vmem:[#allocation10 + $0x3c0] ss:$16 sps:$4 sm:$0xff]   ;;  %v6146_v4 = vld [vmem:[#allocation10 + $0x3c8] ss:$16 sps:$4 sm:$0xff]  }
 0x2a4   :  { %3275 = vmatpush1.bf16.msra.mxu0 %v6077_v5  ;;  %3361 = vmatpush1.bf16.msra.mxu1 %v6080_v6  ;;  %v6151_v5 = vld [vmem:[#allocation10 + $0x3e4] ss:$16 sps:$4 sm:$0xff]   ;;  %v6154_v6 = vld [vmem:[#allocation10 + $0x3ec] ss:$16 sps:$4 sm:$0xff]  }
 0x2a5   :  { %3276 = vmatprep.subr.bf16.mxu0 %v6085_v7  ;;  %3362 = vmatprep.subr.bf16.mxu1 %v6088_v8  ;;  %v6149_v7 = vld [vmem:[#allocation10 + $0x3e0] ss:$16 sps:$4 sm:$0xff]   ;;  %v6152_v8 = vld [vmem:[#allocation10 + $0x3e8] ss:$16 sps:$4 sm:$0xff]  }
 0x2a8   :  { %3277 = vmatpush1.bf16.msra.mxu0 %v6083_v9  ;;  %3363 = vmatpush1.bf16.msra.mxu1 %v6086_v10  ;;  %v2430_v9 = vmax.f32 %v6793_v42, 0.0  ;;  %v6157_v10 = vld [vmem:[#allocation11 + $0x4] ss:$16 sps:$4 sm:$0xff]   ;;  %v6603_v42 = vmov 0.0  }
 0x2a9   :  { %3278 = vmatprep.subr.bf16.mxu0 %v6091_v11  ;;  %3364 = vmatprep.subr.bf16.mxu1 %v6094_v12  ;;  %v6160_v11 = vld [vmem:[#allocation11 + $0xc] ss:$16 sps:$4 sm:$0xff]   ;;  %v2426_v12 = vmax.f32 %v6784_v33, 0.0 }
 0x2ac   :  { %3279 = vmatpush1.bf16.msra.mxu0 %v6089_v13  ;;  %3365 = vmatpush1.bf16.msra.mxu1 %v6092_v14  ;;  %v6155_v13 = vld [vmem:[#allocation11] ss:$16 sps:$4 sm:$0xff]   ;;  %v6158_v14 = vld [vmem:[#allocation11 + $0x8] ss:$16 sps:$4 sm:$0xff]  }
 0x2ad   :  { %3280 = vmatprep.subr.bf16.mxu0 %v6097_v15  ;;  %3366 = vmatprep.subr.bf16.mxu1 %v6100_v16  ;;  %v2434_v15 = vpack.c.bf16 %v2430_v9, %v2426_v12  ;;  %v6163_v16 = vld [vmem:[#allocation11 + $0x24] ss:$16 sps:$4 sm:$0xff]  }
 0x2b0   :  { %3281 = vmatpush1.bf16.msra.mxu0 %v6095_v17  ;;  %3367 = vmatpush1.bf16.msra.mxu1 %v6098_v18  ;;  %v6166_v17 = vld [vmem:[#allocation11 + $0x2c] ss:$16 sps:$4 sm:$0xff]   ;;  %v6161_v18 = vld [vmem:[#allocation11 + $0x20] ss:$16 sps:$4 sm:$0xff]  }
 0x2b1   :  { %3282 = vmatprep.subr.bf16.mxu0 %v6103_v19  ;;  %3368 = vmatprep.subr.bf16.mxu1 %v6106_v20  ;;  %v6164_v19 = vld [vmem:[#allocation11 + $0x28] ss:$16 sps:$4 sm:$0xff]   ;;  %v6169_v20 = vld [vmem:[#allocation11 + $0x44] ss:$16 sps:$4 sm:$0xff]  }
 0x2b4   :  { %3283 = vmatpush1.bf16.msra.mxu0 %v6101_v21  ;;  %3369 = vmatpush1.bf16.msra.mxu1 %v6104_v22  ;;  %v6172_v21 = vld [vmem:[#allocation11 + $0x4c] ss:$16 sps:$4 sm:$0xff]   ;;  %v6167_v22 = vld [vmem:[#allocation11 + $0x40] ss:$16 sps:$4 sm:$0xff]  }
 0x2b5   :  { %3284 = vmatprep.subr.bf16.mxu0 %v6109_v24  ;;  %3370 = vmatprep.subr.bf16.mxu1 %v6112_v27  ;;  %v6170_v24 = vld [vmem:[#allocation11 + $0x48] ss:$16 sps:$4 sm:$0xff]   ;;  %v6175_v27 = vld [vmem:[#allocation11 + $0x64] ss:$16 sps:$4 sm:$0xff]  }
 0x2b8   :  { %3285 = vmatpush1.bf16.msra.mxu0 %v6107_v29  ;;  %3371 = vmatpush1.bf16.msra.mxu1 %v6110_v30  ;;  %v6178_v29 = vld [vmem:[#allocation11 + $0x6c] ss:$16 sps:$4 sm:$0xff]   ;;  %v6173_v30 = vld [vmem:[#allocation11 + $0x60] ss:$16 sps:$4 sm:$0xff]  }
 0x2b9   :  { %3286 = vmatprep.subr.bf16.mxu0 %v6115_v31  ;;  %3372 = vmatprep.subr.bf16.mxu1 %v6118_v32  ;;  %v6176_v31 = vld [vmem:[#allocation11 + $0x68] ss:$16 sps:$4 sm:$0xff]   ;;  %v6181_v32 = vld [vmem:[#allocation11 + $0x84] ss:$16 sps:$4 sm:$0xff]  }
 0x2bc   :  { %3287 = vmatpush1.bf16.msra.mxu0 %v6113_v34  ;;  %3373 = vmatpush1.bf16.msra.mxu1 %v6116_v35  ;;  %v6184_v34 = vld [vmem:[#allocation11 + $0x8c] ss:$16 sps:$4 sm:$0xff]   ;;  %v6179_v35 = vld [vmem:[#allocation11 + $0x80] ss:$16 sps:$4 sm:$0xff]  }
 0x2bd   :  { %3288 = vmatprep.subr.bf16.mxu0 %v6121_v36  ;;  %3374 = vmatprep.subr.bf16.mxu1 %v6124_v38  ;;  %v6182_v36 = vld [vmem:[#allocation11 + $0x88] ss:$16 sps:$4 sm:$0xff]   ;;  %v6187_v38 = vld [vmem:[#allocation11 + $0xa4] ss:$16 sps:$4 sm:$0xff]  }
 0x2c0   :  { %3289 = vmatpush1.bf16.msra.mxu0 %v6119_v39  ;;  %3375 = vmatpush1.bf16.msra.mxu1 %v6122_v43  ;;  %v6190_v39 = vld [vmem:[#allocation11 + $0xac] ss:$16 sps:$4 sm:$0xff]   ;;  %v6185_v43 = vld [vmem:[#allocation11 + $0xa0] ss:$16 sps:$4 sm:$0xff]  }
 0x2c1   :  { %3290 = vmatprep.subr.bf16.mxu0 %v6127_v44  ;;  %3376 = vmatprep.subr.bf16.mxu1 %v6130_v53  ;;  %v6188_v44 = vld [vmem:[#allocation11 + $0xa8] ss:$16 sps:$4 sm:$0xff]   ;;  %v6193_v53 = vld [vmem:[#allocation11 + $0xc4] ss:$16 sps:$4 sm:$0xff]  }
 0x2c4   :  { %3291 = vmatpush1.bf16.msra.mxu0 %v6125_v54  ;;  %3377 = vmatpush1.bf16.msra.mxu1 %v6128_v55  ;;  %v6196_v54 = vld [vmem:[#allocation11 + $0xcc] ss:$16 sps:$4 sm:$0xff]   ;;  %v6191_v55 = vld [vmem:[#allocation11 + $0xc0] ss:$16 sps:$4 sm:$0xff]  }
 0x2c5   :  { %3292 = vmatprep.subr.bf16.mxu0 %v6133_v57  ;;  %3378 = vmatprep.subr.bf16.mxu1 %v6136_v58  ;;  %v6194_v57 = vld [vmem:[#allocation11 + $0xc8] ss:$16 sps:$4 sm:$0xff]   ;;  %v6199_v58 = vld [vmem:[#allocation11 + $0xe4] ss:$16 sps:$4 sm:$0xff]  }
 0x2c8   :  { %3293 = vmatpush1.bf16.msra.mxu0 %v6131_v59  ;;  %3379 = vmatpush1.bf16.msra.mxu1 %v6134_v60  ;;  %v6202_v59 = vld [vmem:[#allocation11 + $0xec] ss:$16 sps:$4 sm:$0xff]   ;;  %v6197_v60 = vld [vmem:[#allocation11 + $0xe0] ss:$16 sps:$4 sm:$0xff]  }
 0x2c9   :  { %3294 = vmatprep.subr.bf16.mxu0 %v6139_v61  ;;  %3380 = vmatprep.subr.bf16.mxu1 %v6142_v62  ;;  %v6200_v61 = vld [vmem:[#allocation11 + $0xe8] ss:$16 sps:$4 sm:$0xff]   ;;  %v6205_v62 = vld [vmem:[#allocation11 + $0x104] ss:$16 sps:$4 sm:$0xff]  }
 0x2cc   :  { %3295 = vmatpush1.bf16.msra.mxu0 %v6137_v63  ;;  %3381 = vmatpush1.bf16.msra.mxu1 %v6140_v0  ;;  %v6208_v63 = vld [vmem:[#allocation11 + $0x10c] ss:$16 sps:$4 sm:$0xff]   ;;  %v6203_v0 = vld [vmem:[#allocation11 + $0x100] ss:$16 sps:$4 sm:$0xff]  }
 0x2cd   :  { %3296 = vmatprep.subr.bf16.mxu0 %v6145_v1  ;;  %3382 = vmatprep.subr.bf16.mxu1 %v6148_v2  ;;  %v6206_v1 = vld [vmem:[#allocation11 + $0x108] ss:$16 sps:$4 sm:$0xff]   ;;  %v6211_v2 = vld [vmem:[#allocation11 + $0x124] ss:$16 sps:$4 sm:$0xff]  }
 0x2d0   :  { %3297 = vmatpush1.bf16.msra.mxu0 %v6143_v3  ;;  %3383 = vmatpush1.bf16.msra.mxu1 %v6146_v4  ;;  %v6214_v3 = vld [vmem:[#allocation11 + $0x12c] ss:$16 sps:$4 sm:$0xff]   ;;  %v6209_v4 = vld [vmem:[#allocation11 + $0x120] ss:$16 sps:$4 sm:$0xff]  }
 0x2d1   :  { %3298 = vmatprep.subr.bf16.mxu0 %v6151_v5  ;;  %3384 = vmatprep.subr.bf16.mxu1 %v6154_v6  ;;  %v6212_v5 = vld [vmem:[#allocation11 + $0x128] ss:$16 sps:$4 sm:$0xff]   ;;  %v6217_v6 = vld [vmem:[#allocation11 + $0x144] ss:$16 sps:$4 sm:$0xff]  }
 0x2d4   :  { %3299 = vmatpush1.bf16.msra.mxu0 %v6149_v7  ;;  %3385 = vmatpush1.bf16.msra.mxu1 %v6152_v8  ;;  %v6220_v7 = vld [vmem:[#allocation11 + $0x14c] ss:$16 sps:$4 sm:$0xff]   ;;  %v6215_v8 = vld [vmem:[#allocation11 + $0x140] ss:$16 sps:$4 sm:$0xff]  }
 0x2d5   :  { %4198 = vmatprep.subr.bf16.mxu0 %v6157_v10  ;;  %4284 = vmatprep.subr.bf16.mxu1 %v6160_v11  ;;  %v6218_v10 = vld [vmem:[#allocation11 + $0x148] ss:$16 sps:$4 sm:$0xff]   ;;  %v6223_v11 = vld [vmem:[#allocation11 + $0x164] ss:$16 sps:$4 sm:$0xff]  }
 0x2d7   :  { %3301 = vmatmul.mubr.bf16.vlgmr.msra.gmra.mrb[4].mxu0 %v2434_v15  ;;  %3387 = vmatmul.mubr.bf16.vlgmr.msra.gmra.mrb[4].mxu1 %v2434_v15  ;;  %v6224_v15 = vld [vmem:[#allocation11 + $0x168] ss:$16 sps:$4 sm:$0xff]  }
 0x2d8   :  { %4199 = vmatpush1.bf16.msra.mxu0 %v6155_v13  ;;  %4285 = vmatpush1.bf16.msra.mxu1 %v6158_v14  ;;  %v6226_v13 = vld [vmem:[#allocation11 + $0x16c] ss:$16 sps:$4 sm:$0xff]   ;;  %v6221_v14 = vld [vmem:[#allocation11 + $0x160] ss:$16 sps:$4 sm:$0xff]  }
 0x2d9   :  { %4200 = vmatprep.subr.bf16.mxu0 %v6163_v16  ;;  %4286 = vmatprep.subr.bf16.mxu1 %v6166_v17  ;;  %v6229_v16 = vld [vmem:[#allocation11 + $0x184] ss:$16 sps:$4 sm:$0xff]   ;;  %v6232_v17 = vld [vmem:[#allocation11 + $0x18c] ss:$16 sps:$4 sm:$0xff]  }
 0x2dc   :  { %4201 = vmatpush1.bf16.msra.mxu0 %v6161_v18  ;;  %4287 = vmatpush1.bf16.msra.mxu1 %v6164_v19  ;;  %v6227_v18 = vld [vmem:[#allocation11 + $0x180] ss:$16 sps:$4 sm:$0xff]   ;;  %v6230_v19 = vld [vmem:[#allocation11 + $0x188] ss:$16 sps:$4 sm:$0xff]  }
 0x2dd   :  { %4202 = vmatprep.subr.bf16.mxu0 %v6169_v20  ;;  %4288 = vmatprep.subr.bf16.mxu1 %v6172_v21  ;;  %v6235_v20 = vld [vmem:[#allocation11 + $0x1a4] ss:$16 sps:$4 sm:$0xff]   ;;  %v6238_v21 = vld [vmem:[#allocation11 + $0x1ac] ss:$16 sps:$4 sm:$0xff]  }
 0x2e0   :  { %4203 = vmatpush1.bf16.msra.mxu0 %v6167_v22  ;;  %4289 = vmatpush1.bf16.msra.mxu1 %v6170_v24  ;;  %v6233_v22 = vld [vmem:[#allocation11 + $0x1a0] ss:$16 sps:$4 sm:$0xff]   ;;  %v6236_v24 = vld [vmem:[#allocation11 + $0x1a8] ss:$16 sps:$4 sm:$0xff]  }
 0x2e1   :  { %4204 = vmatprep.subr.bf16.mxu0 %v6175_v27  ;;  %4290 = vmatprep.subr.bf16.mxu1 %v6178_v29  ;;  %v6241_v27 = vld [vmem:[#allocation11 + $0x1c4] ss:$16 sps:$4 sm:$0xff]   ;;  %v6244_v29 = vld [vmem:[#allocation11 + $0x1cc] ss:$16 sps:$4 sm:$0xff]  }
 0x2e4   :  { %4205 = vmatpush1.bf16.msra.mxu0 %v6173_v30  ;;  %4291 = vmatpush1.bf16.msra.mxu1 %v6176_v31  ;;  %v6239_v30 = vld [vmem:[#allocation11 + $0x1c0] ss:$16 sps:$4 sm:$0xff]   ;;  %v6242_v31 = vld [vmem:[#allocation11 + $0x1c8] ss:$16 sps:$4 sm:$0xff]  }
 0x2e5   :  { %4206 = vmatprep.subr.bf16.mxu0 %v6181_v32  ;;  %4292 = vmatprep.subr.bf16.mxu1 %v6184_v34  ;;  %v6247_v32 = vld [vmem:[#allocation11 + $0x1e4] ss:$16 sps:$4 sm:$0xff]   ;;  %v6250_v34 = vld [vmem:[#allocation11 + $0x1ec] ss:$16 sps:$4 sm:$0xff]  }
 0x2e8   :  { %4207 = vmatpush1.bf16.msra.mxu0 %v6179_v35  ;;  %4293 = vmatpush1.bf16.msra.mxu1 %v6182_v36  ;;  %v6245_v35 = vld [vmem:[#allocation11 + $0x1e0] ss:$16 sps:$4 sm:$0xff]   ;;  %v6248_v36 = vld [vmem:[#allocation11 + $0x1e8] ss:$16 sps:$4 sm:$0xff]  }
 0x2e9   :  { %4208 = vmatprep.subr.bf16.mxu0 %v6187_v38  ;;  %4294 = vmatprep.subr.bf16.mxu1 %v6190_v39  ;;  %v6253_v38 = vld [vmem:[#allocation11 + $0x204] ss:$16 sps:$4 sm:$0xff]   ;;  %v6256_v39 = vld [vmem:[#allocation11 + $0x20c] ss:$16 sps:$4 sm:$0xff]  }
 0x2ec   :  { %4209 = vmatpush1.bf16.msra.mxu0 %v6185_v43  ;;  %4295 = vmatpush1.bf16.msra.mxu1 %v6188_v44  ;;  %v140_v43 = vld [vmem:[#allocation14 + $0x1] ss:$8 sm:$0xf] }
 0x2ed   :  { %4210 = vmatprep.subr.bf16.mxu0 %v6193_v53  ;;  %4296 = vmatprep.subr.bf16.mxu1 %v6196_v54  ;;  %v2568_v44 = vrot.slane %v140_v43, %v6777_v26  ;;  %v2576_v53 = vrot.slane %v140_v43, %v6773_v23  ;;  %v2572_v54 = vrot.slane %v140_v43, %v6775_v25 }
 0x2f0   :  { %4211 = vmatpush1.bf16.msra.mxu0 %v6191_v55  ;;  %4297 = vmatpush1.bf16.msra.mxu1 %v6194_v57  ;;  %v2580_v55 = vrot.slane %v140_v43, %v6780_v28  ;;  %v6274_v43 = vld [vmem:[#allocation11 + $0x26c] ss:$16 sps:$4 sm:$0xff]  }
 0x2f1   :  { %4212 = vmatprep.subr.bf16.mxu0 %v6199_v58  ;;  %4298 = vmatprep.subr.bf16.mxu1 %v6202_v59 }
 0x2f4   :  { %4213 = vmatpush1.bf16.msra.mxu0 %v6197_v60  ;;  %4299 = vmatpush1.bf16.msra.mxu1 %v6200_v61 }
 0x2f5   :  { %4214 = vmatprep.subr.bf16.mxu0 %v6205_v62  ;;  %4300 = vmatprep.subr.bf16.mxu1 %v6208_v63 }
 0x2f8   :  { %4215 = vmatpush1.bf16.msra.mxu0 %v6203_v0  ;;  %4301 = vmatpush1.bf16.msra.mxu1 %v6206_v1 }
 0x2f9   :  { %4216 = vmatprep.subr.bf16.mxu0 %v6211_v2  ;;  %4302 = vmatprep.subr.bf16.mxu1 %v6214_v3 }
 0x2fc   :  { %4217 = vmatpush1.bf16.msra.mxu0 %v6209_v4  ;;  %4303 = vmatpush1.bf16.msra.mxu1 %v6212_v5 }
 0x2fd   :  { %4218 = vmatprep.subr.bf16.mxu0 %v6217_v6  ;;  %4304 = vmatprep.subr.bf16.mxu1 %v6220_v7 }
 0x300   :  { %4219 = vmatpush1.bf16.msra.mxu0 %v6215_v8  ;;  %4305 = vmatpush1.bf16.msra.mxu1 %v6218_v10 }
 0x301   :  { %4220 = vmatprep.subr.bf16.mxu0 %v6223_v11  ;;  %4306 = vmatprep.subr.bf16.mxu1 %v6226_v13 }
 0x304   :  { %4221 = vmatpush1.bf16.msra.mxu0 %v6221_v14  ;;  %4307 = vmatpush1.bf16.msra.mxu1 %v6224_v15 }
 0x305   :  { %4222 = vmatprep.subr.bf16.mxu0 %v6229_v16  ;;  %4308 = vmatprep.subr.bf16.mxu1 %v6232_v17 }
 0x308   :  { %4223 = vmatpush1.bf16.msra.mxu0 %v6227_v18  ;;  %4309 = vmatpush1.bf16.msra.mxu1 %v6230_v19 }
 0x309   :  { %4224 = vmatprep.subr.bf16.mxu0 %v6235_v20  ;;  %4310 = vmatprep.subr.bf16.mxu1 %v6238_v21 }
 0x30c   :  { %4225 = vmatpush1.bf16.msra.mxu0 %v6233_v22  ;;  %4311 = vmatpush1.bf16.msra.mxu1 %v6236_v24  ;;  %v6251_v24 = vld [vmem:[#allocation11 + $0x200] ss:$16 sps:$4 sm:$0xff]  }
 0x30d   :  { %4226 = vmatprep.subr.bf16.mxu0 %v6241_v27  ;;  %4312 = vmatprep.subr.bf16.mxu1 %v6244_v29  ;;  %v6254_v27 = vld [vmem:[#allocation11 + $0x208] ss:$16 sps:$4 sm:$0xff]   ;;  %v6259_v29 = vld [vmem:[#allocation11 + $0x224] ss:$16 sps:$4 sm:$0xff]  }
 0x310   :  { %4227 = vmatpush1.bf16.msra.mxu0 %v6239_v30  ;;  %4313 = vmatpush1.bf16.msra.mxu1 %v6242_v31  ;;  %v6262_v30 = vld [vmem:[#allocation11 + $0x22c] ss:$16 sps:$4 sm:$0xff]   ;;  %v6257_v31 = vld [vmem:[#allocation11 + $0x220] ss:$16 sps:$4 sm:$0xff]  }
 0x311   :  { %4228 = vmatprep.subr.bf16.mxu0 %v6247_v32  ;;  %4314 = vmatprep.subr.bf16.mxu1 %v6250_v34  ;;  %v6260_v32 = vld [vmem:[#allocation11 + $0x228] ss:$16 sps:$4 sm:$0xff]   ;;  %v6265_v34 = vld [vmem:[#allocation11 + $0x244] ss:$16 sps:$4 sm:$0xff]  }
 0x314   :  { %4229 = vmatpush1.bf16.msra.mxu0 %v6245_v35  ;;  %4315 = vmatpush1.bf16.msra.mxu1 %v6248_v36  ;;  %v6268_v35 = vld [vmem:[#allocation11 + $0x24c] ss:$16 sps:$4 sm:$0xff]   ;;  %v6263_v36 = vld [vmem:[#allocation11 + $0x240] ss:$16 sps:$4 sm:$0xff]  }
 0x315   :  { %4241 = vmatprep.subr.bf16.mxu0 %v6253_v38  ;;  %4327 = vmatprep.subr.bf16.mxu1 %v6256_v39  ;;  %v6266_v38 = vld [vmem:[#allocation11 + $0x248] ss:$16 sps:$4 sm:$0xff]   ;;  %v6271_v39 = vld [vmem:[#allocation11 + $0x264] ss:$16 sps:$4 sm:$0xff]  }
 0x3aa   :  { %v3302_v57 = vpop.f32.mrb[4].mxu0  ;;  %v3388_v58 = vpop.f32.mrb[4].mxu1 }
 0x3ab   :  { %v5440_v59 = vadd.f32 %v3302_v57, %v2568_v44  ;;  %v5444_v60 = vadd.f32 %v3388_v58, %v2576_v53  ;;  %v3304_v61 = vpop.f32.mrb[5].mxu0  ;;  %v3390_v62 = vpop.f32.mrb[5].mxu1  ;;  %v6275_v57 = vld [vmem:[#allocation11 + $0x280] ss:$16 sps:$4 sm:$0xff]   ;;  %v6278_v58 = vld [vmem:[#allocation11 + $0x288] ss:$16 sps:$4 sm:$0xff]  }
 0x3ac   :  { %v5441_v63 = vadd.f32 %v3304_v61, %v2572_v54  ;;  %v5445_v0 = vadd.f32 %v3390_v62, %v2580_v55  ;;  %v3306_v1 = vpop.f32.mrb[6].mxu0  ;;  %v3392_v2 = vpop.f32.mrb[6].mxu1  ;;  %v6281_v61 = vld [vmem:[#allocation11 + $0x2a0] ss:$16 sps:$4 sm:$0xff]   ;;  %v6284_v62 = vld [vmem:[#allocation11 + $0x2a8] ss:$16 sps:$4 sm:$0xff]  }
 0x3ad   :  { %v5442_v3 = vadd.f32 %v3306_v1, %v2568_v44  ;;  %v5446_v4 = vadd.f32 %v3392_v2, %v2576_v53  ;;  %v3308_v5 = vpop.f32.mrb[7].mxu0  ;;  %v3394_v6 = vpop.f32.mrb[7].mxu1  ;;  %v3397_v10 = vmax.f32 %v5440_v59, 0.0  ;;  %v3399_v11 = vmax.f32 %v5444_v60, 0.0  ;;  %v6269_v44 = vld [vmem:[#allocation11 + $0x260] ss:$16 sps:$4 sm:$0xff]  }
 0x3ae   :  { %v5443_v7 = vadd.f32 %v3308_v5, %v2572_v54  ;;  %v5447_v8 = vadd.f32 %v3394_v6, %v2580_v55  ;;  %v3398_v15 = vmax.f32 %v5441_v63, 0.0  ;;  %v3400_v16 = vmax.f32 %v5445_v0, 0.0  ;;  %v6272_v53 = vld [vmem:[#allocation11 + $0x268] ss:$16 sps:$4 sm:$0xff]   ;;  %v6277_v54 = vld [vmem:[#allocation11 + $0x284] ss:$16 sps:$4 sm:$0xff]  }
 0x3af   :  { %v3401_v13 = vmax.f32 %v5442_v3, 0.0  ;;  %v3403_v14 = vmax.f32 %v5446_v4, 0.0  ;;  %v6280_v55 = vld [vmem:[#allocation11 + $0x28c] ss:$16 sps:$4 sm:$0xff]   ;;  %v6283_v59 = vld [vmem:[#allocation11 + $0x2a4] ss:$16 sps:$4 sm:$0xff]  }
 0x3b0   :  { %v3402_v17 = vmax.f32 %v5443_v7, 0.0  ;;  %v3404_v18 = vmax.f32 %v5447_v8, 0.0  ;;  %v6286_v60 = vld [vmem:[#allocation11 + $0x2ac] ss:$16 sps:$4 sm:$0xff]   ;;  %v6289_v63 = vld [vmem:[#allocation11 + $0x2c4] ss:$16 sps:$4 sm:$0xff]  }
 0x3b1   :  { %v3405_v19 = vpack.c.bf16 %v3401_v13, %v3397_v10  ;;  %v6829_v20 = vpack.c.bf16 %v3403_v14, %v3399_v11  ;;  %v6292_v0 = vld [vmem:[#allocation11 + $0x2cc] ss:$16 sps:$4 sm:$0xff]   ;;  %v6287_v1 = vld [vmem:[#allocation11 + $0x2c0] ss:$16 sps:$4 sm:$0xff]   ;;  %v6290_v2 = vld [vmem:[#allocation11 + $0x2c8] ss:$16 sps:$4 sm:$0xff]  }
 0x3b2   :  { %v3406_v21 = vpack.c.bf16 %v3402_v17, %v3398_v15  ;;  %v3408_v22 = vpack.c.bf16 %v3404_v18, %v3400_v16  ;;  %v6295_v3 = vld [vmem:[#allocation11 + $0x2e4] ss:$16 sps:$4 sm:$0xff]   ;;  %v6298_v4 = vld [vmem:[#allocation11 + $0x2ec] ss:$16 sps:$4 sm:$0xff]   ;;  %v6293_v5 = vld [vmem:[#allocation11 + $0x2e0] ss:$16 sps:$4 sm:$0xff]  }
 0x3b3   :  { %v6296_v6 = vld [vmem:[#allocation11 + $0x2e8] ss:$16 sps:$4 sm:$0xff]   ;;  %v6301_v7 = vld [vmem:[#allocation11 + $0x304] ss:$16 sps:$4 sm:$0xff]   ;;  %v6304_v8 = vld [vmem:[#allocation11 + $0x30c] ss:$16 sps:$4 sm:$0xff]  }
 0x3b4   :  { %4230 = vmatprep.mubr.bf16.mxu0 %v3406_v21  ;;  %4316 = vmatprep.mubr.bf16.mxu1 %v3406_v21  ;;  %v6299_v10 = vld [vmem:[#allocation11 + $0x300] ss:$16 sps:$4 sm:$0xff]   ;;  %v6302_v11 = vld [vmem:[#allocation11 + $0x308] ss:$16 sps:$4 sm:$0xff]   ;;  %v6307_v13 = vld [vmem:[#allocation11 + $0x324] ss:$16 sps:$4 sm:$0xff]  }
 0x3b5   :  { %4231 = vmatmul.mubr.bf16.vlgmr.msra.gmra.mrb[8].mxu0 %v3405_v19  ;;  %4317 = vmatmul.mubr.bf16.vlgmr.msra.gmra.mrb[8].mxu1 %v3405_v19  ;;  %v6310_v14 = vld [vmem:[#allocation11 + $0x32c] ss:$16 sps:$4 sm:$0xff]   ;;  %v6305_v15 = vld [vmem:[#allocation11 + $0x320] ss:$16 sps:$4 sm:$0xff]   ;;  %v6308_v16 = vld [vmem:[#allocation11 + $0x328] ss:$16 sps:$4 sm:$0xff]  }
 0x3b6   :  { %4242 = vmatpush1.bf16.msra.mxu0 %v6251_v24  ;;  %4328 = vmatpush1.bf16.msra.mxu1 %v6254_v27  ;;  %v6313_v17 = vld [vmem:[#allocation11 + $0x344] ss:$16 sps:$4 sm:$0xff]   ;;  %v6316_v18 = vld [vmem:[#allocation11 + $0x34c] ss:$16 sps:$4 sm:$0xff]   ;;  %v6311_v19 = vld [vmem:[#allocation11 + $0x340] ss:$16 sps:$4 sm:$0xff]  }
 0x3b7   :  { %4273 = vmatprep.mubr.bf16.mxu0 %v3408_v22  ;;  %4359 = vmatprep.mubr.bf16.mxu1 %v3408_v22  ;;  %v6314_v21 = vld [vmem:[#allocation11 + $0x348] ss:$16 sps:$4 sm:$0xff]   ;;  %v6319_v22 = vld [vmem:[#allocation11 + $0x364] ss:$16 sps:$4 sm:$0xff]   ;;  %v6322_v24 = vld [vmem:[#allocation11 + $0x36c] ss:$16 sps:$4 sm:$0xff]  }
 0x3b8   :  { %4243 = vmatprep.subr.bf16.mxu0 %v6259_v29  ;;  %4329 = vmatprep.subr.bf16.mxu1 %v6262_v30  ;;  %v6317_v27 = vld [vmem:[#allocation11 + $0x360] ss:$16 sps:$4 sm:$0xff]   ;;  %v6320_v29 = vld [vmem:[#allocation11 + $0x368] ss:$16 sps:$4 sm:$0xff]   ;;  %v6325_v30 = vld [vmem:[#allocation11 + $0x384] ss:$16 sps:$4 sm:$0xff]  }
 0x3ba   :  { %4244 = vmatpush1.bf16.msra.mxu0 %v6257_v31  ;;  %4330 = vmatpush1.bf16.msra.mxu1 %v6260_v32  ;;  %v6328_v31 = vld [vmem:[#allocation11 + $0x38c] ss:$16 sps:$4 sm:$0xff]   ;;  %v6323_v32 = vld [vmem:[#allocation11 + $0x380] ss:$16 sps:$4 sm:$0xff]  }
 0x3bb   :  { %4245 = vmatprep.subr.bf16.mxu0 %v6265_v34  ;;  %4331 = vmatprep.subr.bf16.mxu1 %v6268_v35  ;;  %v6326_v34 = vld [vmem:[#allocation11 + $0x388] ss:$16 sps:$4 sm:$0xff]   ;;  %v6331_v35 = vld [vmem:[#allocation11 + $0x3a4] ss:$16 sps:$4 sm:$0xff]  }
 0x3be   :  { %4246 = vmatpush1.bf16.msra.mxu0 %v6263_v36  ;;  %4332 = vmatpush1.bf16.msra.mxu1 %v6266_v38  ;;  %v6334_v36 = vld [vmem:[#allocation11 + $0x3ac] ss:$16 sps:$4 sm:$0xff]   ;;  %v6329_v38 = vld [vmem:[#allocation11 + $0x3a0] ss:$16 sps:$4 sm:$0xff]  }
 0x3bf   :  { %4247 = vmatprep.subr.bf16.mxu0 %v6271_v39  ;;  %4333 = vmatprep.subr.bf16.mxu1 %v6274_v43  ;;  %v6332_v39 = vld [vmem:[#allocation11 + $0x3a8] ss:$16 sps:$4 sm:$0xff]   ;;  %v6337_v43 = vld [vmem:[#allocation11 + $0x3c4] ss:$16 sps:$4 sm:$0xff]  }
 0x3c2   :  { %4248 = vmatpush1.bf16.msra.mxu0 %v6269_v44  ;;  %4334 = vmatpush1.bf16.msra.mxu1 %v6272_v53  ;;  %v6340_v44 = vld [vmem:[#allocation11 + $0x3cc] ss:$16 sps:$4 sm:$0xff]   ;;  %v6335_v53 = vld [vmem:[#allocation11 + $0x3c0] ss:$16 sps:$4 sm:$0xff]  }
 0x3c3   :  { %4249 = vmatprep.subr.bf16.mxu0 %v6277_v54  ;;  %4335 = vmatprep.subr.bf16.mxu1 %v6280_v55  ;;  %v6338_v54 = vld [vmem:[#allocation11 + $0x3c8] ss:$16 sps:$4 sm:$0xff]   ;;  %v6343_v55 = vld [vmem:[#allocation11 + $0x3e4] ss:$16 sps:$4 sm:$0xff]  }
 0x3c6   :  { %4250 = vmatpush1.bf16.msra.mxu0 %v6275_v57  ;;  %4336 = vmatpush1.bf16.msra.mxu1 %v6278_v58  ;;  %v6346_v57 = vld [vmem:[#allocation11 + $0x3ec] ss:$16 sps:$4 sm:$0xff]   ;;  %v6341_v58 = vld [vmem:[#allocation11 + $0x3e0] ss:$16 sps:$4 sm:$0xff]  }
 0x3c7   :  { %4251 = vmatprep.subr.bf16.mxu0 %v6283_v59  ;;  %4337 = vmatprep.subr.bf16.mxu1 %v6286_v60  ;;  %v6344_v59 = vld [vmem:[#allocation11 + $0x3e8] ss:$16 sps:$4 sm:$0xff]   ;;  %v6347_v60 = vld [vmem:[#allocation13 + $0x40] sm:$0xff]  }
 0x3ca   :  { %4252 = vmatpush1.bf16.msra.mxu0 %v6281_v61  ;;  %4338 = vmatpush1.bf16.msra.mxu1 %v6284_v62  ;;  %v6348_v61 = vld [vmem:[#allocation13 + $0xc0] sm:$0xff]  }
 0x3cb   :  { %4253 = vmatprep.subr.bf16.mxu0 %v6289_v63  ;;  %4339 = vmatprep.subr.bf16.mxu1 %v6292_v0  ;;  %v6349_v62 = vld [vmem:[#allocation13] sm:$0xff]   ;;  %v6351_v0 = vld [vmem:[#allocation13 + $0x48] sm:$0xff]  }
 0x3cc   :  { %v6350_v63 = vld [vmem:[#allocation13 + $0x80] sm:$0xff]  }
 0x3ce   :  { %4254 = vmatpush1.bf16.msra.mxu0 %v6287_v1  ;;  %4340 = vmatpush1.bf16.msra.mxu1 %v6290_v2  ;;  %v6352_v1 = vld [vmem:[#allocation13 + $0xc8] sm:$0xff]  }
 0x3cf   :  { %4255 = vmatprep.subr.bf16.mxu0 %v6295_v3  ;;  %4341 = vmatprep.subr.bf16.mxu1 %v6298_v4  ;;  %v6353_v2 = vld [vmem:[#allocation13 + $0x8] sm:$0xff]   ;;  %v6355_v4 = vld [vmem:[#allocation13 + $0x50] sm:$0xff]  }
 0x3d0   :  { %v6354_v3 = vld [vmem:[#allocation13 + $0x88] sm:$0xff]  }
 0x3d2   :  { %4256 = vmatpush1.bf16.msra.mxu0 %v6293_v5  ;;  %4342 = vmatpush1.bf16.msra.mxu1 %v6296_v6  ;;  %v6356_v5 = vld [vmem:[#allocation13 + $0xd0] sm:$0xff]  }
 0x3d3   :  { %4257 = vmatprep.subr.bf16.mxu0 %v6301_v7  ;;  %4343 = vmatprep.subr.bf16.mxu1 %v6304_v8  ;;  %v6357_v6 = vld [vmem:[#allocation13 + $0x10] sm:$0xff]   ;;  %v6359_v8 = vld [vmem:[#allocation13 + $0x58] sm:$0xff]  }
 0x3d4   :  { %v6358_v7 = vld [vmem:[#allocation13 + $0x90] sm:$0xff]  }
 0x3d6   :  { %4258 = vmatpush1.bf16.msra.mxu0 %v6299_v10  ;;  %4344 = vmatpush1.bf16.msra.mxu1 %v6302_v11  ;;  %v6360_v10 = vld [vmem:[#allocation13 + $0xd8] sm:$0xff]  }
 0x3d7   :  { %4259 = vmatprep.subr.bf16.mxu0 %v6307_v13  ;;  %4345 = vmatprep.subr.bf16.mxu1 %v6310_v14  ;;  %v6361_v11 = vld [vmem:[#allocation13 + $0x18] sm:$0xff]   ;;  %v6363_v13 = vld [vmem:[#allocation13 + $0x60] sm:$0xff]  }
 0x3d8   :  { %v6364_v14 = vld [vmem:[#allocation13 + $0xe0] sm:$0xff]  }
 0x3da   :  { %4260 = vmatpush1.bf16.msra.mxu0 %v6305_v15  ;;  %4346 = vmatpush1.bf16.msra.mxu1 %v6308_v16  ;;  %v6365_v15 = vld [vmem:[#allocation13 + $0x20] sm:$0xff]  }
 0x3db   :  { %4261 = vmatprep.subr.bf16.mxu0 %v6313_v17  ;;  %4347 = vmatprep.subr.bf16.mxu1 %v6316_v18  ;;  %v6366_v16 = vld [vmem:[#allocation13 + $0xa0] sm:$0xff]   ;;  %v6367_v17 = vld [vmem:[#allocation13 + $0x68] sm:$0xff]  }
 0x3dc   :  { %v6368_v18 = vld [vmem:[#allocation13 + $0xe8] sm:$0xff]  }
 0x3de   :  { %4262 = vmatpush1.bf16.msra.mxu0 %v6311_v19  ;;  %4348 = vmatpush1.bf16.msra.mxu1 %v6314_v21  ;;  %v6369_v19 = vld [vmem:[#allocation13 + $0x28] sm:$0xff]  }
 0x3df   :  { %4263 = vmatprep.subr.bf16.mxu0 %v6319_v22  ;;  %4349 = vmatprep.subr.bf16.mxu1 %v6322_v24  ;;  %v6370_v21 = vld [vmem:[#allocation13 + $0xa8] sm:$0xff]   ;;  %v6371_v22 = vld [vmem:[#allocation13 + $0x70] sm:$0xff]  }
 0x3e0   :  { %v6372_v24 = vld [vmem:[#allocation13 + $0xf0] sm:$0xff]  }
 0x3e2   :  { %4264 = vmatpush1.bf16.msra.mxu0 %v6317_v27  ;;  %4350 = vmatpush1.bf16.msra.mxu1 %v6320_v29  ;;  %v6373_v27 = vld [vmem:[#allocation13 + $0x30] sm:$0xff]  }
 0x3e3   :  { %4265 = vmatprep.subr.bf16.mxu0 %v6325_v30  ;;  %4351 = vmatprep.subr.bf16.mxu1 %v6328_v31  ;;  %v6374_v29 = vld [vmem:[#allocation13 + $0xb0] sm:$0xff]   ;;  %v6375_v30 = vld [vmem:[#allocation13 + $0x78] sm:$0xff]  }
 0x3e4   :  { %v6376_v31 = vld [vmem:[#allocation13 + $0xf8] sm:$0xff]  }
 0x3e6   :  { %4266 = vmatpush1.bf16.msra.mxu0 %v6323_v32  ;;  %4352 = vmatpush1.bf16.msra.mxu1 %v6326_v34  ;;  %v6377_v32 = vld [vmem:[#allocation13 + $0x38] sm:$0xff]  }
 0x3e7   :  { %4267 = vmatprep.subr.bf16.mxu0 %v6331_v35  ;;  %4353 = vmatprep.subr.bf16.mxu1 %v6334_v36  ;;  %v6378_v34 = vld [vmem:[#allocation13 + $0xb8] sm:$0xff]  }
 0x3e8   :  { %v142_v35 = vld [vmem:[#allocation14 + $0x2] ss:$8 sm:$0xf] }
 0x3e9   :  { %v3541_v36 = vrot.slane %v142_v35, %v6777_v26 }
 0x3ea   :  { %4268 = vmatpush1.bf16.msra.mxu0 %v6329_v38  ;;  %4354 = vmatpush1.bf16.msra.mxu1 %v6332_v39  ;;  %v3549_v38 = vrot.slane %v142_v35, %v6773_v23  ;;  %v3545_v39 = vrot.slane %v142_v35, %v6775_v25 }
 0x3eb   :  { %4269 = vmatprep.subr.bf16.mxu0 %v6337_v43  ;;  %4355 = vmatprep.subr.bf16.mxu1 %v6340_v44  ;;  %v3553_v43 = vrot.slane %v142_v35, %v6780_v28  ;;  %v145_v35 = vld [vmem:[#allocation14 + $0x5] ss:$0 sm:$0xff] }
 0x3ee   :  { %4270 = vmatpush1.bf16.msra.mxu0 %v6335_v53  ;;  %4356 = vmatpush1.bf16.msra.mxu1 %v6338_v54 }
 0x3ef   :  { %4271 = vmatprep.subr.bf16.mxu0 %v6343_v55  ;;  %4357 = vmatprep.subr.bf16.mxu1 %v6346_v57 }
 0x3f2   :  { %4272 = vmatpush1.bf16.msra.mxu0 %v6341_v58  ;;  %4358 = vmatpush1.bf16.msra.mxu1 %v6344_v59 }
 0x3f3   :  { %5388 = vmatprep.subr.bf16.mxu0 %v6347_v60  ;;  %5410 = vmatprep.subr.bf16.mxu1 %v6348_v61 }
 0x3f5   :  { %4274 = vmatmul.mubr.bf16.vlgmr.msra.gmra.mrb[8].mxu0 %v6829_v20  ;;  %4360 = vmatmul.mubr.bf16.vlgmr.msra.gmra.mrb[8].mxu1 %v6829_v20  ;;  %v6362_v20 = vld [vmem:[#allocation13 + $0x98] sm:$0xff]  }
 0x3f6   :  { %5389 = vmatpush3.bf16.msra.mxu0 %v6349_v62  ;;  %5411 = vmatpush3.bf16.msra.mxu1 %v6350_v63 }
 0x3f7   :  { %5390 = vmatprep.subr.bf16.mxu0 %v6351_v0  ;;  %5412 = vmatprep.subr.bf16.mxu1 %v6352_v1 }
 0x3fa   :  { %5391 = vmatpush3.bf16.msra.mxu0 %v6353_v2  ;;  %5413 = vmatpush3.bf16.msra.mxu1 %v6354_v3 }
 0x3fb   :  { %5392 = vmatprep.subr.bf16.mxu0 %v6355_v4  ;;  %5414 = vmatprep.subr.bf16.mxu1 %v6356_v5 }
 0x3fe   :  { %5393 = vmatpush3.bf16.msra.mxu0 %v6357_v6  ;;  %5415 = vmatpush3.bf16.msra.mxu1 %v6358_v7 }
 0x3ff   :  { %5394 = vmatprep.subr.bf16.mxu0 %v6359_v8  ;;  %5416 = vmatprep.subr.bf16.mxu1 %v6360_v10 }
 0x402   :  { %5395 = vmatpush3.bf16.msra.mxu0 %v6361_v11  ;;  %5417 = vmatpush3.bf16.msra.mxu1 %v6362_v20 }
 0x403   :  { %5396 = vmatprep.subr.bf16.mxu0 %v6363_v13  ;;  %5418 = vmatprep.subr.bf16.mxu1 %v6364_v14 }
 0x406   :  { %5397 = vmatpush3.bf16.msra.mxu0 %v6365_v15  ;;  %5419 = vmatpush3.bf16.msra.mxu1 %v6366_v16 }
 0x407   :  { %5398 = vmatprep.subr.bf16.mxu0 %v6367_v17  ;;  %5420 = vmatprep.subr.bf16.mxu1 %v6368_v18 }
 0x40a   :  { %5399 = vmatpush3.bf16.msra.mxu0 %v6369_v19  ;;  %5421 = vmatpush3.bf16.msra.mxu1 %v6370_v21 }
 0x40b   :  { %5400 = vmatprep.subr.bf16.mxu0 %v6371_v22  ;;  %5422 = vmatprep.subr.bf16.mxu1 %v6372_v24 }
 0x40e   :  { %5401 = vmatpush3.bf16.msra.mxu0 %v6373_v27  ;;  %5423 = vmatpush3.bf16.msra.mxu1 %v6374_v29 }
 0x40f   :  { %5402 = vmatprep.subr.bf16.mxu0 %v6375_v30  ;;  %5424 = vmatprep.subr.bf16.mxu1 %v6376_v31 }
 0x412   :  { %5403 = vmatpush3.bf16.msra.mxu0 %v6377_v32  ;;  %5425 = vmatpush3.bf16.msra.mxu1 %v6378_v34 }
 0x413   :  { %5434 = vmatprep.subr.bf16.mxu0 %v6603_v42 }
 0x4c8   :  { %v4275_v44 = vpop.f32.mrb[8].mxu0  ;;  %v4361_v53 = vpop.f32.mrb[8].mxu1 }
 0x4c9   :  { %v5448_v54 = vadd.f32 %v4275_v44, %v3541_v36  ;;  %v5452_v55 = vadd.f32 %v4361_v53, %v3549_v38  ;;  %v4277_v57 = vpop.f32.mrb[9].mxu0  ;;  %v4363_v58 = vpop.f32.mrb[9].mxu1 }
 0x4ca   :  { %v5449_v59 = vadd.f32 %v4277_v57, %v3545_v39  ;;  %v5453_v60 = vadd.f32 %v4363_v58, %v3553_v43  ;;  %v4279_v61 = vpop.f32.mrb[10].mxu0  ;;  %v4365_v62 = vpop.f32.mrb[10].mxu1 }
 0x4cb   :  { %v4370_v63 = vadd.f32 %v5448_v54, %v2424_v51  ;;  %v4372_v23 = vadd.f32 %v5452_v55, %v2426_v12  ;;  %v5450_v26 = vadd.f32 %v4279_v61, %v3541_v36  ;;  %v5454_v25 = vadd.f32 %v4365_v62, %v3549_v38  ;;  %v4281_v0 = vpop.f32.mrb[11].mxu0  ;;  %v4367_v28 = vpop.f32.mrb[11].mxu1 }
 0x4cc   :  { %v4371_v1 = vadd.f32 %v5449_v59, %v2425_v49  ;;  %v4373_v2 = vadd.f32 %v5453_v60, %v2427_v56  ;;  %v5451_v3 = vadd.f32 %v4281_v0, %v3545_v39  ;;  %v5455_v4 = vadd.f32 %v4367_v28, %v3553_v43  ;;  %v4735_v38 = vpop.permute.xlu0 %4734 }
 0x4cd   :  { %v4374_v5 = vadd.f32 %v5450_v26, %v2428_v48  ;;  %v4376_v40 = vadd.f32 %v5454_v25, %v2430_v9  ;;  %v4378_v12 = vmax.f32 %v4370_v63, 0.0  ;;  %v4380_v37 = vmax.f32 %v4372_v23, 0.0  ;;  %v143_v9 = vld [vmem:[#allocation14 + $0x3] ss:$0 sm:$0xff] }
 0x4ce   :  { %v4375_v33 = vadd.f32 %v5451_v3, %v2429_v50  ;;  %v4377_v51 = vadd.f32 %v5455_v4, %v2431_v52  ;;  %v4379_v47 = vmax.f32 %v4371_v1, 0.0  ;;  %v4381_v56 = vmax.f32 %v4373_v2, 0.0 }
 0x4cf   :  { %v4382_v49 = vmax.f32 %v4374_v5, 0.0  ;;  %v4384_v6 = vmax.f32 %v4376_v40, 0.0  ;;  %v4730_v36 = vpack.c.bf16 %v145_v35, %v145_v35 }
 0x4d0   :  { %v4383_v7 = vmax.f32 %v4375_v33, 0.0  ;;  %v4385_v8 = vmax.f32 %v4377_v51, 0.0 }
 0x4d1   :  { %v4386_v10 = vpack.c.bf16 %v4382_v49, %v4378_v12  ;;  %v4388_v41 = vpack.c.bf16 %v4384_v6, %v4380_v37 }
 0x4d2   :  { %v4387_v48 = vpack.c.bf16 %v4383_v7, %v4379_v47  ;;  %v4389_v11 = vpack.c.bf16 %v4385_v8, %v4381_v56 }
 0x4d4   :  { %4678 = vmatprep.mubr.bf16.mxu0 %v4387_v48  ;;  %4719 = vmatprep.mubr.bf16.mxu1 %v4389_v11 }
 0x4d5   :  { %4679 = vmatmul.mubr.bf16.vlgmr.msra.gmra.mrb[12].mxu0 %v4386_v10  ;;  %4720 = vmatmul.mubr.bf16.vlgmr.msra.gmra.mrb[12].mxu1 %v4388_v41 }
 0x4d6   :  { %5436 = vmatprep.mubr.msk.bf16.mxu0 %vm6604_vm5, %v6603_v42 }
 0x5a8   :  { %v5404_v50 = vpop.f32.mrb[12].mxu0  ;;  %v5426_v52 = vpop.f32.mrb[12].mxu1 }
 0x5a9   :  { %v5405_v20 = vpop.f32.mrb[13].mxu0  ;;  %v5427_v13 = vpop.f32.mrb[13].mxu1 }
 0x5aa   :  { %v5406_v14 = vadd.f32 %v5405_v20, %v5404_v50  ;;  %v5428_v15 = vadd.f32 %v5427_v13, %v5426_v52  ;;  %v5407_v16 = vpop.f32.mrb[14].mxu0  ;;  %v5429_v17 = vpop.f32.mrb[14].mxu1 }
 0x5ab   :  { %v5408_v18 = vpop.f32.mrb[15].mxu0  ;;  %v5430_v19 = vpop.f32.mrb[15].mxu1 }
 0x5ac   :  { %v4681_v21 = vadd.f32 %v5406_v14, %v143_v9  ;;  %v5409_v22 = vadd.f32 %v5408_v18, %v5407_v16  ;;  %v5431_v24 = vadd.f32 %v5430_v19, %v5429_v17 }
 0x5ae   :  { %v4722_v27 = vadd.f32 %v5428_v15, %v4681_v21  ;;  %v4684_v29 = vadd.f32 %v5409_v22, %v143_v9 }
 0x5b0   :  { %v4725_v30 = vadd.f32 %v5431_v24, %v4684_v29  ;;  %v4728_v31 = vmax.f32 %v4722_v27, 0.0 }
 0x5b2   :  { %v4729_v32 = vmax.f32 %v4725_v30, 0.0 }
 0x5b4   :  { %v4731_v34 = vpack.c.bf16 %v4729_v32, %v4728_v31 }
 0x5b6   :  { %5435 = vmatpush3.bf16.xpose.msra.mxu0 %v4731_v34 }
 0x5bd   :  { %5437 = vmatmul.mubr.bf16.vlgmr.msra.gmra.mrb[16].mxu0 %v4730_v36 }
 0x690   :  { %v4771_v39 = vpop.f32.mrb[16].mxu0 }
 0x691   :  { %v4772_v43 = vadd.f32 %v4771_v39, %v4735_v38  ;;  %v5438_v44 = vpop.f32.mrb[17].mxu0 }
 0x692   :  { %v4774_v53 = vpop.f32.mrb[18].mxu0 }
 0x693   :  { %v5439_v54 = vpop.f32.mrb[19].mxu0  ;;  %4778 = vst.msk [vmem:[#allocation16] sm:$0x1] %vm4777_vm6, %v4772_v43 }
 0x694   :  { %6566 = shalt.err (!%p6563_p12)
}
 0x695   :  { %s6567_s12 = scalar_lea.hbm %s6873_s8, 16 }
 0x696   :  { %p6568_p13 = scmp.ne.s32.totalorder %s6873_s8, %s6567_s12  ;;  %p6571_p0 = scmp.lt.u32.totalorder %s6567_s12, %s6873_s8 }
 0x698   :  { %p6573_p1 = pnand %p6571_p0, %p6568_p13 }
 0x69a   :  { %6576 = shalt.err (!%p6573_p1)
}
 0x69b   :  { %4788 = dma.vmem_to_hbm [thread:$0]  %s4786_s5, 16, %s6873_s8, [#allocation4]  }
 0x69c   :  { %6587 = dma.done.wait [#allocation4], 16  }
 0x69d   :  { %6588 = vsyncadd [#allocation4], 4294967280 }
 0x69e   :  { %4792 = vsyncpa [#allocation3], 1 }
 0x69f   :  { %4793 = vsyncpa [#allocation6], 1 }
 0x6a0   :  { %4794 = vsyncpa [#allocation9], 1 }
 0x6a1   :  { %4795 = vsyncpa [#allocation12], 1 }
 0x6a2   :  { %4796 = vsyncpa [#allocation15], 1 }
 0x6a3   :  { %4797 = vsyncpa [#allocation4], 1 }

</bundles_post_ra>
